<compile_context>
chip_gen: v5e
topology: v5e:2x2
jax: 0.10.0
libtpu: 0.0.40
codegen_flags: <defaults>
</compile_context>

<pallas_src>
import numpy as np
import jax
import jax.numpy as jnp
from jax.experimental import pallas as pl
from jax.experimental.pallas import tpu as pltpu

LANE = 128  # TPU lane width; all activations / weights are padded lane-dense.


# ----------------------------------------------------------------------------
# One-time parameter packing: torch layout -> one (rows, 128) f32 slab.
# ----------------------------------------------------------------------------
def pack_tcn_params(params):
    pieces = []
    cur = 0

    def add(arr2d, rows_pad):
        nonlocal cur
        a = jnp.asarray(arr2d, jnp.float32)
        r, c = a.shape
        buf = jnp.zeros((rows_pad, LANE), jnp.float32).at[:r, :c].set(a)
        pieces.append(buf)
        off = cur
        cur += rows_pad
        return off

    blocks = []
    for blk in params["blocks"]:
        w1, w2 = blk["w1"], blk["w2"]                 # (Cout, Cin, 2) torch layout
        ent = dict(
            w1t0=add(w1[:, :, 0].T, LANE),            # tap 0: multiplies x[t-d]
            w1t1=add(w1[:, :, 1].T, LANE),            # tap 1: multiplies x[t]
            b1=add(blk["b1"].reshape(1, -1), 8),
            w2t0=add(w2[:, :, 0].T, LANE),
            w2t1=add(w2[:, :, 1].T, LANE),
            b2=add(blk["b2"].reshape(1, -1), 8),
            dilation=int(blk["dilation"]),
            has_downsample=bool(blk["has_downsample"]),
        )
        if ent["has_downsample"]:
            ent["wd"] = add(blk["wd"].T, LANE)
            ent["bd"] = add(blk["bd"].reshape(1, -1), 8)
        blocks.append(ent)

    lin_w_off = add(params["lin_w"].T, LANE)          # (C_last, O) -> (128, 128)
    lin_b_off = add(params["lin_b"].reshape(1, -1), 8)

    return dict(slab=jnp.concatenate(pieces, axis=0),
                blocks=tuple(blocks),
                lin_w_off=lin_w_off, lin_b_off=lin_b_off,
                out_dim=int(params["lin_w"].shape[0]))


# ----------------------------------------------------------------------------
# Fused Pallas kernel (all TemporalBlocks + final Linear), single pallas_call.
#   x_ref : (B*L, 128) f32 (lanes >= num_inputs are zero)
#   w_ref : (rows, 128) f32 parameter slab
#   o_ref : (B*L, 128) f32 (lanes >= outputs are zero -> sliced in wrapper)
# ----------------------------------------------------------------------------
def _make_fused_tcn_kernel(layout, B, L):
    blocks = layout["blocks"]

    def kernel(x_ref, w_ref, o_ref):
        h = x_ref[...]                                # (B*L, 128)
        BL = B * L

        # Within-batch time index + per-dilation causal masks, hoisted once and
        # broadcast to full lane width (reused by both convs of every block).
        t = jax.lax.broadcasted_iota(jnp.int32, (BL, 1), 0) % L
        keep = {d: jnp.broadcast_to(t >= d, (BL, LANE))
                for d in sorted({ent["dilation"] for ent in blocks})}

        def w(off):                                   # (128, 128) weight block
            return w_ref[off:off + LANE, :]

        def b(off):                                   # (1, 128) bias row
            return w_ref[off:off + 1, :]

        def shifted(v, d):
            # v_prev[t] = v[t-d] within each batch, zeros for t < d
            # (== symmetric pad + Chomp1d).  Roll wraparound rows are exactly
            # the masked rows, so no cross-batch leakage.
            return jnp.where(keep[d], pltpu.roll(v, shift=d, axis=0), 0.0)

        for ent in blocks:
            d = ent["dilation"]
            # conv1 (dilated, causal, K=2 -> two summed matmuls) + ReLU
            h1 = (jnp.dot(shifted(h, d), w(ent["w1t0"]),
                          preferred_element_type=jnp.float32)
                  + jnp.dot(h, w(ent["w1t1"]),
                            preferred_element_type=jnp.float32)
                  + b(ent["b1"]))
            h1 = jnp.maximum(h1, 0.0)
            # conv2 + ReLU (dropout == identity in eval mode)
            h2 = (jnp.dot(shifted(h1, d), w(ent["w2t0"]),
                          preferred_element_type=jnp.float32)
                  + jnp.dot(h1, w(ent["w2t1"]),
                            preferred_element_type=jnp.float32)
                  + b(ent["b2"]))
            h2 = jnp.maximum(h2, 0.0)
            # residual: 1x1 conv only when channel counts differ
            if ent["has_downsample"]:
                res = jnp.dot(h, w(ent["wd"]),
                              preferred_element_type=jnp.float32) + b(ent["bd"])
            else:
                res = h
            h = jnp.maximum(h2 + res, 0.0)

        # final nn.Linear; output is lane-dense (N padded to 128)
        o_ref[...] = (jnp.dot(h, w(layout["lin_w_off"]),
                              preferred_element_type=jnp.float32)
                      + b(layout["lin_b_off"]))

    return kernel


# ----------------------------------------------------------------------------
# Forward pass wrapper
# ----------------------------------------------------------------------------
def tcn_forward_pallas(x, packed, pre_len):
    """TemporalConvNet.forward. x: (B, L, num_inputs) -> (B, pre_len, outputs)."""
    B, L, Cin = x.shape
    O = packed["out_dim"]
    BL = B * L

    x_pad = jnp.zeros((BL, LANE), jnp.float32).at[:, :Cin].set(
        x.reshape(BL, Cin).astype(jnp.float32))

    kernel = _make_fused_tcn_kernel(packed, B, L)
    vmem = pl.BlockSpec(memory_space=pltpu.MemorySpace.VMEM)
    y = pl.pallas_call(
        kernel,
        out_shape=jax.ShapeDtypeStruct((BL, LANE), jnp.float32),
        in_specs=[vmem, vmem],
        out_specs=vmem,
    )(x_pad, packed["slab"])

    return y[:, :O].reshape(B, L, O)[:, L - pre_len:, :]


# ----------------------------------------------------------------------------
# Deterministic parameter construction (synthetic; mirrors module __init__)
# ----------------------------------------------------------------------------
def init_tcn_params(key, num_inputs, outputs, num_channels, kernel_size=2):
    def make_conv(k, cin, cout, ksz):
        kw, kb = jax.random.split(k)
        # weight_norm(g * v / ||v||) is exactly v at init -> fold as w = v
        # (avoids the latent 0/0 if a filter norm were exactly zero).
        w = 0.01 * jax.random.normal(kw, (cout, cin, ksz), jnp.float32)
        bound = 1.0 / float(np.sqrt(cin * ksz))
        b = jax.random.uniform(kb, (cout,), jnp.float32, -bound, bound)
        return w, b

    params = {"blocks": []}
    in_ch = num_inputs
    for i, out_ch in enumerate(num_channels):
        key, k1, k2, k3 = jax.random.split(key, 4)
        w1, b1 = make_conv(k1, in_ch, out_ch, kernel_size)
        w2, b2 = make_conv(k2, out_ch, out_ch, kernel_size)
        has_ds = in_ch != out_ch
        if has_ds:
            kdw, kdb = jax.random.split(k3)
            wd = 0.01 * jax.random.normal(kdw, (out_ch, in_ch), jnp.float32)
            bound = 1.0 / float(np.sqrt(in_ch))
            bd = jax.random.uniform(kdb, (out_ch,), jnp.float32, -bound, bound)
        else:
            wd = None
            bd = None
        params["blocks"].append(dict(
            w1=w1, b1=b1, w2=w2, b2=b2,
            wd=wd, bd=bd, has_downsample=has_ds, dilation=2 ** i))
        in_ch = out_ch

    key, klw, klb = jax.random.split(key, 3)
    bound = 1.0 / float(np.sqrt(in_ch))
    params["lin_w"] = jax.random.uniform(klw, (outputs, in_ch), jnp.float32,
                                         -bound, bound)
    params["lin_b"] = jax.random.uniform(klb, (outputs,), jnp.float32,
                                         -bound, bound)
    return params


# ----------------------------------------------------------------------------
# Pure-JAX reference (lax.conv) for verification
# ----------------------------------------------------------------------------
def reference_forward(x, params, pre_len, kernel_size=2):
    h = jnp.transpose(x, (0, 2, 1))                  # (B, C, L) == x.permute(0,2,1)
    for blk in params["blocks"]:
        d = blk["dilation"]
        pad = (kernel_size - 1) * d

        def conv(inp, w, b):
            out = jax.lax.conv_general_dilated(
                inp, w, window_strides=(1,), padding=[(pad, 0)],
                rhs_dilation=(d,), dimension_numbers=("NCH", "OIH", "NCH"))
            return out + b[None, :, None]

        out = jax.nn.relu(conv(h, blk["w1"], blk["b1"]))
        out = jax.nn.relu(conv(out, blk["w2"], blk["b2"]))
        if blk["has_downsample"]:
            res = jnp.einsum("oc,bcl->bol", blk["wd"], h) + blk["bd"][None, :, None]
        else:
            res = h
        h = jax.nn.relu(out + res)
    h = jnp.transpose(h, (0, 2, 1))                  # (B, L, C)
    y = h @ params["lin_w"].T + params["lin_b"]
    return y[:, -pre_len:, :]


# ----------------------------------------------------------------------------
if __name__ == "__main__":
    key = jax.random.PRNGKey(0)
    kx, kp = jax.random.split(key)

    B, L = 2, 16
    num_inputs, outputs, pre_len = 4, 3, 4
    num_channels = [8, 8, 16]                        # dilations 1, 2, 4

    x = jax.random.normal(kx, (B, L, num_inputs), jnp.float32)
    params = init_tcn_params(kp, num_inputs, outputs, num_channels)
    packed = pack_tcn_params(params)                 # one-time weight packing

    out = tcn_forward_pallas(x, packed, pre_len)
    out = jax.block_until_ready(out)

    assert out.shape == (B, pre_len, outputs), out.shape
    ref = reference_forward(x, params, pre_len)
    np.testing.assert_allclose(np.asarray(out), np.asarray(ref),
                               rtol=1e-5, atol=1e-5)
    print("KERNEL_OK")
</pallas_src>

<mosaic_0001>
module attributes {stable_mosaic.version = 11 : i64} {
  func.func @kernel(%arg0: memref<32x128xf32, #tpu.memory_space<vmem>>, %arg1: memref<1992x128xf32, #tpu.memory_space<vmem>>, %arg2: memref<32x128xf32, #tpu.memory_space<vmem>>) attributes {dimension_semantics = [], scalar_prefetch = 0 : i64, scratch_operands = 0 : i64, tpu.core_type = #tpu.core_type<tc>} {
    %c0 = arith.constant 0 : index
    %c0_0 = arith.constant 0 : index
    %0 = vector.load %arg0[%c0, %c0_0] : memref<32x128xf32, #tpu.memory_space<vmem>>, vector<32x128xf32>
    %1 = tpu.iota {dimensions = array<i32: 0>} : vector<32x1xi32>
    %c16_i32 = arith.constant 16 : i32
    %c0_i32 = arith.constant 0 : i32
    %2 = arith.cmpi eq, %c16_i32, %c0_i32 : i32
    %c1_i32 = arith.constant 1 : i32
    %3 = arith.select %2, %c1_i32, %c16_i32 : i32
    %4 = vector.broadcast %3 : i32 to vector<32x1xi32>
    %5 = arith.remsi %1, %4 : vector<32x1xi32>
    %c0_i32_1 = arith.constant 0 : i32
    %6 = vector.broadcast %c0_i32_1 : i32 to vector<32x1xi32>
    %7 = arith.cmpi ne, %5, %6 : vector<32x1xi32>
    %c0_i32_2 = arith.constant 0 : i32
    %8 = vector.broadcast %c0_i32_2 : i32 to vector<32x1xi32>
    %9 = arith.cmpi slt, %5, %8 : vector<32x1xi32>
    %c0_i32_3 = arith.constant 0 : i32
    %10 = arith.cmpi slt, %3, %c0_i32_3 : i32
    %11 = vector.broadcast %10 : i1 to vector<32x1xi1>
    %12 = vector.broadcast %11 : vector<32x1xi1> to vector<32x1xi1>
    %13 = arith.xori %9, %12 : vector<32x1xi1>
    %14 = arith.andi %13, %7 : vector<32x1xi1>
    %15 = vector.broadcast %3 : i32 to vector<32x1xi32>
    %16 = arith.addi %5, %15 : vector<32x1xi32>
    %17 = arith.select %14, %16, %5 : vector<32x1xi1>, vector<32x1xi32>
    %c1_i32_4 = arith.constant 1 : i32
    %18 = vector.broadcast %c1_i32_4 : i32 to vector<32x1xi32>
    %19 = arith.cmpi sge, %17, %18 : vector<32x1xi32>
    %20 = vector.shape_cast %19 : vector<32x1xi1> to vector<32x1xi1>
    %21 = vector.broadcast %20 : vector<32x1xi1> to vector<32x128xi1>
    %c2_i32 = arith.constant 2 : i32
    %22 = vector.broadcast %c2_i32 : i32 to vector<32x1xi32>
    %23 = arith.cmpi sge, %17, %22 : vector<32x1xi32>
    %24 = vector.shape_cast %23 : vector<32x1xi1> to vector<32x1xi1>
    %25 = vector.broadcast %24 : vector<32x1xi1> to vector<32x128xi1>
    %c4_i32 = arith.constant 4 : i32
    %26 = vector.broadcast %c4_i32 : i32 to vector<32x1xi32>
    %27 = arith.cmpi sge, %17, %26 : vector<32x1xi32>
    %28 = vector.shape_cast %27 : vector<32x1xi1> to vector<32x1xi1>
    %29 = vector.broadcast %28 : vector<32x1xi1> to vector<32x128xi1>
    %c1_i32_5 = arith.constant 1 : i32
    %30 = tpu.dynamic_rotate %0 by %c1_i32_5 dim 0 : vector<32x128xf32>, i32 -> vector<32x128xf32>
    %cst = arith.constant 0.000000e+00 : f32
    %31 = vector.broadcast %cst : f32 to vector<32x128xf32>
    %32 = arith.select %21, %30, %31 : vector<32x128xi1>, vector<32x128xf32>
    %c0_6 = arith.constant 0 : index
    %c0_7 = arith.constant 0 : index
    %33 = vector.load %arg1[%c0_6, %c0_7] : memref<1992x128xf32, #tpu.memory_space<vmem>>, vector<128x128xf32>
    %cst_8 = arith.constant dense<0.000000e+00> : vector<32x128xf32>
    %34 = tpu.matmul %32, %33, %cst_8 {dimension_numbers = #tpu.dot_dimension_numbers<[1], [0], [0], [1], [0, 0, 1, 1], [], []>} : vector<32x128xf32>, vector<128x128xf32>, vector<32x128xf32> -> vector<32x128xf32>
    %c128 = arith.constant 128 : index
    %c0_9 = arith.constant 0 : index
    %35 = vector.load %arg1[%c128, %c0_9] : memref<1992x128xf32, #tpu.memory_space<vmem>>, vector<128x128xf32>
    %cst_10 = arith.constant dense<0.000000e+00> : vector<32x128xf32>
    %36 = tpu.matmul %0, %35, %cst_10 {dimension_numbers = #tpu.dot_dimension_numbers<[1], [0], [0], [1], [0, 0, 1, 1], [], []>} : vector<32x128xf32>, vector<128x128xf32>, vector<32x128xf32> -> vector<32x128xf32>
    %37 = arith.addf %34, %36 : vector<32x128xf32>
    %c256 = arith.constant 256 : index
    %c0_11 = arith.constant 0 : index
    %38 = vector.load %arg1[%c256, %c0_11] : memref<1992x128xf32, #tpu.memory_space<vmem>>, vector<1x128xf32>
    %39 = vector.broadcast %38 : vector<1x128xf32> to vector<32x128xf32>
    %40 = arith.addf %37, %39 : vector<32x128xf32>
    %cst_12 = arith.constant 0.000000e+00 : f32
    %41 = vector.broadcast %cst_12 : f32 to vector<32x128xf32>
    %42 = arith.maximumf %40, %41 : vector<32x128xf32>
    %c1_i32_13 = arith.constant 1 : i32
    %43 = tpu.dynamic_rotate %42 by %c1_i32_13 dim 0 : vector<32x128xf32>, i32 -> vector<32x128xf32>
    %cst_14 = arith.constant 0.000000e+00 : f32
    %44 = vector.broadcast %cst_14 : f32 to vector<32x128xf32>
    %45 = arith.select %21, %43, %44 : vector<32x128xi1>, vector<32x128xf32>
    %c264 = arith.constant 264 : index
    %c0_15 = arith.constant 0 : index
    %46 = vector.load %arg1[%c264, %c0_15] : memref<1992x128xf32, #tpu.memory_space<vmem>>, vector<128x128xf32>
    %cst_16 = arith.constant dense<0.000000e+00> : vector<32x128xf32>
    %47 = tpu.matmul %45, %46, %cst_16 {dimension_numbers = #tpu.dot_dimension_numbers<[1], [0], [0], [1], [0, 0, 1, 1], [], []>} : vector<32x128xf32>, vector<128x128xf32>, vector<32x128xf32> -> vector<32x128xf32>
    %c392 = arith.constant 392 : index
    %c0_17 = arith.constant 0 : index
    %48 = vector.load %arg1[%c392, %c0_17] : memref<1992x128xf32, #tpu.memory_space<vmem>>, vector<128x128xf32>
    %cst_18 = arith.constant dense<0.000000e+00> : vector<32x128xf32>
    %49 = tpu.matmul %42, %48, %cst_18 {dimension_numbers = #tpu.dot_dimension_numbers<[1], [0], [0], [1], [0, 0, 1, 1], [], []>} : vector<32x128xf32>, vector<128x128xf32>, vector<32x128xf32> -> vector<32x128xf32>
    %50 = arith.addf %47, %49 : vector<32x128xf32>
    %c520 = arith.constant 520 : index
    %c0_19 = arith.constant 0 : index
    %51 = vector.load %arg1[%c520, %c0_19] : memref<1992x128xf32, #tpu.memory_space<vmem>>, vector<1x128xf32>
    %52 = vector.broadcast %51 : vector<1x128xf32> to vector<32x128xf32>
    %53 = arith.addf %50, %52 : vector<32x128xf32>
    %cst_20 = arith.constant 0.000000e+00 : f32
    %54 = vector.broadcast %cst_20 : f32 to vector<32x128xf32>
    %55 = arith.maximumf %53, %54 : vector<32x128xf32>
    %c528 = arith.constant 528 : index
    %c0_21 = arith.constant 0 : index
    %56 = vector.load %arg1[%c528, %c0_21] : memref<1992x128xf32, #tpu.memory_space<vmem>>, vector<128x128xf32>
    %cst_22 = arith.constant dense<0.000000e+00> : vector<32x128xf32>
    %57 = tpu.matmul %0, %56, %cst_22 {dimension_numbers = #tpu.dot_dimension_numbers<[1], [0], [0], [1], [0, 0, 1, 1], [], []>} : vector<32x128xf32>, vector<128x128xf32>, vector<32x128xf32> -> vector<32x128xf32>
    %c656 = arith.constant 656 : index
    %c0_23 = arith.constant 0 : index
    %58 = vector.load %arg1[%c656, %c0_23] : memref<1992x128xf32, #tpu.memory_space<vmem>>, vector<1x128xf32>
    %59 = vector.broadcast %58 : vector<1x128xf32> to vector<32x128xf32>
    %60 = arith.addf %57, %59 : vector<32x128xf32>
    %61 = arith.addf %55, %60 : vector<32x128xf32>
    %cst_24 = arith.constant 0.000000e+00 : f32
    %62 = vector.broadcast %cst_24 : f32 to vector<32x128xf32>
    %63 = arith.maximumf %61, %62 : vector<32x128xf32>
    %c2_i32_25 = arith.constant 2 : i32
    %64 = tpu.dynamic_rotate %63 by %c2_i32_25 dim 0 : vector<32x128xf32>, i32 -> vector<32x128xf32>
    %cst_26 = arith.constant 0.000000e+00 : f32
    %65 = vector.broadcast %cst_26 : f32 to vector<32x128xf32>
    %66 = arith.select %25, %64, %65 : vector<32x128xi1>, vector<32x128xf32>
    %c664 = arith.constant 664 : index
    %c0_27 = arith.constant 0 : index
    %67 = vector.load %arg1[%c664, %c0_27] : memref<1992x128xf32, #tpu.memory_space<vmem>>, vector<128x128xf32>
    %cst_28 = arith.constant dense<0.000000e+00> : vector<32x128xf32>
    %68 = tpu.matmul %66, %67, %cst_28 {dimension_numbers = #tpu.dot_dimension_numbers<[1], [0], [0], [1], [0, 0, 1, 1], [], []>} : vector<32x128xf32>, vector<128x128xf32>, vector<32x128xf32> -> vector<32x128xf32>
    %c792 = arith.constant 792 : index
    %c0_29 = arith.constant 0 : index
    %69 = vector.load %arg1[%c792, %c0_29] : memref<1992x128xf32, #tpu.memory_space<vmem>>, vector<128x128xf32>
    %cst_30 = arith.constant dense<0.000000e+00> : vector<32x128xf32>
    %70 = tpu.matmul %63, %69, %cst_30 {dimension_numbers = #tpu.dot_dimension_numbers<[1], [0], [0], [1], [0, 0, 1, 1], [], []>} : vector<32x128xf32>, vector<128x128xf32>, vector<32x128xf32> -> vector<32x128xf32>
    %71 = arith.addf %68, %70 : vector<32x128xf32>
    %c920 = arith.constant 920 : index
    %c0_31 = arith.constant 0 : index
    %72 = vector.load %arg1[%c920, %c0_31] : memref<1992x128xf32, #tpu.memory_space<vmem>>, vector<1x128xf32>
    %73 = vector.broadcast %72 : vector<1x128xf32> to vector<32x128xf32>
    %74 = arith.addf %71, %73 : vector<32x128xf32>
    %cst_32 = arith.constant 0.000000e+00 : f32
    %75 = vector.broadcast %cst_32 : f32 to vector<32x128xf32>
    %76 = arith.maximumf %74, %75 : vector<32x128xf32>
    %c2_i32_33 = arith.constant 2 : i32
    %77 = tpu.dynamic_rotate %76 by %c2_i32_33 dim 0 : vector<32x128xf32>, i32 -> vector<32x128xf32>
    %cst_34 = arith.constant 0.000000e+00 : f32
    %78 = vector.broadcast %cst_34 : f32 to vector<32x128xf32>
    %79 = arith.select %25, %77, %78 : vector<32x128xi1>, vector<32x128xf32>
    %c928 = arith.constant 928 : index
    %c0_35 = arith.constant 0 : index
    %80 = vector.load %arg1[%c928, %c0_35] : memref<1992x128xf32, #tpu.memory_space<vmem>>, vector<128x128xf32>
    %cst_36 = arith.constant dense<0.000000e+00> : vector<32x128xf32>
    %81 = tpu.matmul %79, %80, %cst_36 {dimension_numbers = #tpu.dot_dimension_numbers<[1], [0], [0], [1], [0, 0, 1, 1], [], []>} : vector<32x128xf32>, vector<128x128xf32>, vector<32x128xf32> -> vector<32x128xf32>
    %c1056 = arith.constant 1056 : index
    %c0_37 = arith.constant 0 : index
    %82 = vector.load %arg1[%c1056, %c0_37] : memref<1992x128xf32, #tpu.memory_space<vmem>>, vector<128x128xf32>
    %cst_38 = arith.constant dense<0.000000e+00> : vector<32x128xf32>
    %83 = tpu.matmul %76, %82, %cst_38 {dimension_numbers = #tpu.dot_dimension_numbers<[1], [0], [0], [1], [0, 0, 1, 1], [], []>} : vector<32x128xf32>, vector<128x128xf32>, vector<32x128xf32> -> vector<32x128xf32>
    %84 = arith.addf %81, %83 : vector<32x128xf32>
    %c1184 = arith.constant 1184 : index
    %c0_39 = arith.constant 0 : index
    %85 = vector.load %arg1[%c1184, %c0_39] : memref<1992x128xf32, #tpu.memory_space<vmem>>, vector<1x128xf32>
    %86 = vector.broadcast %85 : vector<1x128xf32> to vector<32x128xf32>
    %87 = arith.addf %84, %86 : vector<32x128xf32>
    %cst_40 = arith.constant 0.000000e+00 : f32
    %88 = vector.broadcast %cst_40 : f32 to vector<32x128xf32>
    %89 = arith.maximumf %87, %88 : vector<32x128xf32>
    %90 = arith.addf %89, %63 : vector<32x128xf32>
    %cst_41 = arith.constant 0.000000e+00 : f32
    %91 = vector.broadcast %cst_41 : f32 to vector<32x128xf32>
    %92 = arith.maximumf %90, %91 : vector<32x128xf32>
    %c4_i32_42 = arith.constant 4 : i32
    %93 = tpu.dynamic_rotate %92 by %c4_i32_42 dim 0 : vector<32x128xf32>, i32 -> vector<32x128xf32>
    %cst_43 = arith.constant 0.000000e+00 : f32
    %94 = vector.broadcast %cst_43 : f32 to vector<32x128xf32>
    %95 = arith.select %29, %93, %94 : vector<32x128xi1>, vector<32x128xf32>
    %c1192 = arith.constant 1192 : index
    %c0_44 = arith.constant 0 : index
    %96 = vector.load %arg1[%c1192, %c0_44] : memref<1992x128xf32, #tpu.memory_space<vmem>>, vector<128x128xf32>
    %cst_45 = arith.constant dense<0.000000e+00> : vector<32x128xf32>
    %97 = tpu.matmul %95, %96, %cst_45 {dimension_numbers = #tpu.dot_dimension_numbers<[1], [0], [0], [1], [0, 0, 1, 1], [], []>} : vector<32x128xf32>, vector<128x128xf32>, vector<32x128xf32> -> vector<32x128xf32>
    %c1320 = arith.constant 1320 : index
    %c0_46 = arith.constant 0 : index
    %98 = vector.load %arg1[%c1320, %c0_46] : memref<1992x128xf32, #tpu.memory_space<vmem>>, vector<128x128xf32>
    %cst_47 = arith.constant dense<0.000000e+00> : vector<32x128xf32>
    %99 = tpu.matmul %92, %98, %cst_47 {dimension_numbers = #tpu.dot_dimension_numbers<[1], [0], [0], [1], [0, 0, 1, 1], [], []>} : vector<32x128xf32>, vector<128x128xf32>, vector<32x128xf32> -> vector<32x128xf32>
    %100 = arith.addf %97, %99 : vector<32x128xf32>
    %c1448 = arith.constant 1448 : index
    %c0_48 = arith.constant 0 : index
    %101 = vector.load %arg1[%c1448, %c0_48] : memref<1992x128xf32, #tpu.memory_space<vmem>>, vector<1x128xf32>
    %102 = vector.broadcast %101 : vector<1x128xf32> to vector<32x128xf32>
    %103 = arith.addf %100, %102 : vector<32x128xf32>
    %cst_49 = arith.constant 0.000000e+00 : f32
    %104 = vector.broadcast %cst_49 : f32 to vector<32x128xf32>
    %105 = arith.maximumf %103, %104 : vector<32x128xf32>
    %c4_i32_50 = arith.constant 4 : i32
    %106 = tpu.dynamic_rotate %105 by %c4_i32_50 dim 0 : vector<32x128xf32>, i32 -> vector<32x128xf32>
    %cst_51 = arith.constant 0.000000e+00 : f32
    %107 = vector.broadcast %cst_51 : f32 to vector<32x128xf32>
    %108 = arith.select %29, %106, %107 : vector<32x128xi1>, vector<32x128xf32>
    %c1456 = arith.constant 1456 : index
    %c0_52 = arith.constant 0 : index
    %109 = vector.load %arg1[%c1456, %c0_52] : memref<1992x128xf32, #tpu.memory_space<vmem>>, vector<128x128xf32>
    %cst_53 = arith.constant dense<0.000000e+00> : vector<32x128xf32>
    %110 = tpu.matmul %108, %109, %cst_53 {dimension_numbers = #tpu.dot_dimension_numbers<[1], [0], [0], [1], [0, 0, 1, 1], [], []>} : vector<32x128xf32>, vector<128x128xf32>, vector<32x128xf32> -> vector<32x128xf32>
    %c1584 = arith.constant 1584 : index
    %c0_54 = arith.constant 0 : index
    %111 = vector.load %arg1[%c1584, %c0_54] : memref<1992x128xf32, #tpu.memory_space<vmem>>, vector<128x128xf32>
    %cst_55 = arith.constant dense<0.000000e+00> : vector<32x128xf32>
    %112 = tpu.matmul %105, %111, %cst_55 {dimension_numbers = #tpu.dot_dimension_numbers<[1], [0], [0], [1], [0, 0, 1, 1], [], []>} : vector<32x128xf32>, vector<128x128xf32>, vector<32x128xf32> -> vector<32x128xf32>
    %113 = arith.addf %110, %112 : vector<32x128xf32>
    %c1712 = arith.constant 1712 : index
    %c0_56 = arith.constant 0 : index
    %114 = vector.load %arg1[%c1712, %c0_56] : memref<1992x128xf32, #tpu.memory_space<vmem>>, vector<1x128xf32>
    %115 = vector.broadcast %114 : vector<1x128xf32> to vector<32x128xf32>
    %116 = arith.addf %113, %115 : vector<32x128xf32>
    %cst_57 = arith.constant 0.000000e+00 : f32
    %117 = vector.broadcast %cst_57 : f32 to vector<32x128xf32>
    %118 = arith.maximumf %116, %117 : vector<32x128xf32>
    %c1720 = arith.constant 1720 : index
    %c0_58 = arith.constant 0 : index
    %119 = vector.load %arg1[%c1720, %c0_58] : memref<1992x128xf32, #tpu.memory_space<vmem>>, vector<128x128xf32>
    %cst_59 = arith.constant dense<0.000000e+00> : vector<32x128xf32>
    %120 = tpu.matmul %92, %119, %cst_59 {dimension_numbers = #tpu.dot_dimension_numbers<[1], [0], [0], [1], [0, 0, 1, 1], [], []>} : vector<32x128xf32>, vector<128x128xf32>, vector<32x128xf32> -> vector<32x128xf32>
    %c1848 = arith.constant 1848 : index
    %c0_60 = arith.constant 0 : index
    %121 = vector.load %arg1[%c1848, %c0_60] : memref<1992x128xf32, #tpu.memory_space<vmem>>, vector<1x128xf32>
    %122 = vector.broadcast %121 : vector<1x128xf32> to vector<32x128xf32>
    %123 = arith.addf %120, %122 : vector<32x128xf32>
    %124 = arith.addf %118, %123 : vector<32x128xf32>
    %cst_61 = arith.constant 0.000000e+00 : f32
    %125 = vector.broadcast %cst_61 : f32 to vector<32x128xf32>
    %126 = arith.maximumf %124, %125 : vector<32x128xf32>
    %c1856 = arith.constant 1856 : index
    %c0_62 = arith.constant 0 : index
    %127 = vector.load %arg1[%c1856, %c0_62] : memref<1992x128xf32, #tpu.memory_space<vmem>>, vector<128x128xf32>
    %cst_63 = arith.constant dense<0.000000e+00> : vector<32x128xf32>
    %128 = tpu.matmul %126, %127, %cst_63 {dimension_numbers = #tpu.dot_dimension_numbers<[1], [0], [0], [1], [0, 0, 1, 1], [], []>} : vector<32x128xf32>, vector<128x128xf32>, vector<32x128xf32> -> vector<32x128xf32>
    %c1984 = arith.constant 1984 : index
    %c0_64 = arith.constant 0 : index
    %129 = vector.load %arg1[%c1984, %c0_64] : memref<1992x128xf32, #tpu.memory_space<vmem>>, vector<1x128xf32>
    %130 = vector.broadcast %129 : vector<1x128xf32> to vector<32x128xf32>
    %131 = arith.addf %128, %130 : vector<32x128xf32>
    %c0_65 = arith.constant 0 : index
    %c0_66 = arith.constant 0 : index
    %132 = vector.load %arg2[%c0_65, %c0_66] : memref<32x128xf32, #tpu.memory_space<vmem>>, vector<32x128xf32>
    tpu.vector_store %arg2[%c0_65, %c0_66], %131 {strides = array<i32>} : memref<32x128xf32, #tpu.memory_space<vmem>>, vector<32x128xf32>,
    return
  }
}

</mosaic_0001>

<bundles_post_ra>
// kernel: tpu_custom_call.1
= control target key start
LH: loop header
LB: loop body
LE: loop exit
PB: predicated region body
PF: predicated region fallthrough
CT: control target
= control target key end

     0   :  { %7 = vsyncpa [#allocation3], 0  ;;  %s1288_s0 = inlined_call_operand.hbm [shape: f32[32,128], index: 0, kind: input, shape index: {}]   ;;  %s1289_s1 = inlined_call_operand.hbm [shape: f32[1992,128], index: 1, kind: input, shape index: {}]   ;;  %s1290_s2 = inlined_call_operand.hbm [shape: f32[32,128], index: 2, kind: output, shape index: {}]  }
   0x1   :  { %8 = vsyncpa [#allocation6], 0 }
   0x2   :  { %9 = vsyncpa [#allocation4], 0  ;;  %s14_s11 = sshll.u32 %s1288_s0, 4  ;;  %s1121_s12 = smov [#allocation2]   ;;  %s15_s11 = int_to_ptr.hbm [resolvable:$true] %s14_s11 }
   0x3   :  { %s16_s13 = sshll.u32 %s1121_s12, 4  ;;  %s27_s16 = sshll.u32 %s1289_s1, 4  ;;  %s17_s13 = int_to_ptr.vmem [resolvable:$true] %s16_s13  ;;  %s28_s16 = int_to_ptr.hbm [resolvable:$true] %s27_s16 }
   0x4   :  { %s1122_s17 = smov 128   ;;  %s1123_s18 = smov 8  }
   0x5   :  { %22 = dma.hbm_to_vmem [thread:$0]  %s15_s11, 512, %s17_s13, [#allocation3], %s1122_s17, %s1122_s17, %s1123_s18  }
   0x6   :  { %s1124_s19 = smov [#allocation5]  }
   0x7   :  { %s29_s20 = sshll.u32 %s1124_s19, 4  ;;  %s30_s20 = int_to_ptr.vmem [resolvable:$true] %s29_s20 }
   0x8   :  { %35 = dma.hbm_to_vmem [thread:$0]  %s28_s16, 31872, %s30_s20, [#allocation6], %s1122_s17, %s1122_s17, %s1123_s18  }
   0x9   :  { %1115 = dma.done.wait [#allocation3], 512  }
   0xa   :  { %1116 = vsyncadd [#allocation3], 4294966784 }
   0xb   :  { %1117 = dma.done.wait [#allocation6], 31872  }
   0xc   :  { %1118 = vsyncadd [#allocation6], 4294935424  ;;  %v181_v0 = vld [vmem:[#allocation5 + $0xf8] sm:$0xff]  ;;  %v180_v2 = vld [vmem:[#allocation5 + $0xf0] sm:$0xff]  ;;  %v48_v20 = vlaneseq  ;;  %s1125_s0 = smov [#allocation7]   ;;  %s987_s23 = sshll.u32 %s1290_s2, 4  ;;  %s988_s23 = int_to_ptr.hbm [resolvable:$true] %s987_s23 }
   0xd   :  { %v165_v1 = vld [vmem:[#allocation5 + $0x78] sm:$0xff]  ;;  %182 = vmatpush.msra.mxu0 %v181_v0  ;;  %v164_v3 = vld [vmem:[#allocation5 + $0x70] sm:$0xff]  ;;  %v179_v4 = vld [vmem:[#allocation5 + $0xe8] sm:$0xff]  ;;  %s985_s1 = sshll.u32 %s1125_s0, 4  ;;  %s986_s1 = int_to_ptr.vmem [resolvable:$true] %s985_s1 }
   0xe   :  { %211 = vmatpush.msra.mxu1 %v165_v1  ;;  %v163_v5 = vld [vmem:[#allocation5 + $0x68] sm:$0xff]  ;;  %v178_v6 = vld [vmem:[#allocation5 + $0xe0] sm:$0xff]  ;;  %v177_v8 = vld [vmem:[#allocation5 + $0xd8] sm:$0xff]  ;;  %v1153_v26 = vshrl.u32 %v48_v20, 7 }
   0xf   :  { %183 = vmatpush.msra.mxu0 %v180_v2  ;;  %v162_v7 = vld [vmem:[#allocation5 + $0x60] sm:$0xff]  ;;  %v161_v9 = vld [vmem:[#allocation5 + $0x58] sm:$0xff]  ;;  %v176_v10 = vld [vmem:[#allocation5 + $0xd0] sm:$0xff] }
  0x10   :  { %212 = vmatpush.msra.mxu1 %v164_v3  ;;  %v160_v11 = vld [vmem:[#allocation5 + $0x50] sm:$0xff]  ;;  %v175_v12 = vld [vmem:[#allocation5 + $0xc8] sm:$0xff]  ;;  %v174_v14 = vld [vmem:[#allocation5 + $0xc0] sm:$0xff]  ;;  %v1161_v34 = vand.u32 15, %v1153_v26  ;;  %vm141_vm0 = vcmp.lt.s32.totalorder %v1153_v26, 1  ;;  %v51_v50 = vadd.s32 16, %v1153_v26 }
  0x11   :  { %184 = vmatpush.msra.mxu0 %v179_v4  ;;  %v159_v13 = vld [vmem:[#allocation5 + $0x48] sm:$0xff]  ;;  %v158_v15 = vld [vmem:[#allocation5 + $0x40] sm:$0xff]  ;;  %v173_v16 = vld [vmem:[#allocation5 + $0xb8] sm:$0xff]  ;;  %vm421_vm4 = vcmp.lt.s32.totalorder %v1153_v26, 2  ;;  %vm654_vm7 = vcmp.lt.s32.totalorder %v1153_v26, 4 }
  0x12   :  { %213 = vmatpush.msra.mxu1 %v163_v5  ;;  %v157_v17 = vld [vmem:[#allocation5 + $0x38] sm:$0xff]  ;;  %v172_v18 = vld [vmem:[#allocation5 + $0xb0] sm:$0xff]  ;;  %v171_v21 = vld [vmem:[#allocation5 + $0xa8] sm:$0xff]  ;;  %vm101_vm1 = vcmp.ge.s32.totalorder %v1161_v34, 1  ;;  %v1181_v55 = vand.u32 15, %v51_v50  ;;  %vm113_vm3 = vcmp.ge.s32.totalorder %v1161_v34, 2 }
  0x13   :  { %185 = vmatpush.msra.mxu0 %v178_v6  ;;  %v156_v19 = vld [vmem:[#allocation5 + $0x30] sm:$0xff]  ;;  %v155_v22 = vld [vmem:[#allocation5 + $0x28] sm:$0xff]  ;;  %v170_v23 = vld [vmem:[#allocation5 + $0xa0] sm:$0xff]  ;;  %vm125_vm6 = vcmp.ge.s32.totalorder %v1161_v34, 4 }
  0x14   :  { %214 = vmatpush.msra.mxu1 %v162_v7  ;;  %v154_v24 = vld [vmem:[#allocation5 + $0x20] sm:$0xff]  ;;  %v169_v25 = vld [vmem:[#allocation5 + $0x98] sm:$0xff]  ;;  %v168_v30 = vld [vmem:[#allocation5 + $0x90] sm:$0xff]  ;;  %vm103_vm2 = vcmp.ge.s32.totalorder %v1181_v55, 1  ;;  %vm115_vm5 = vcmp.ge.s32.totalorder %v1181_v55, 2  ;;  %vm127_vm8 = vcmp.ge.s32.totalorder %v1181_v55, 4 }
  0x15   :  { %186 = vmatpush.msra.mxu0 %v177_v8  ;;  %v153_v27 = vld [vmem:[#allocation5 + $0x18] sm:$0xff]  ;;  %v1155_v28 = vld [vmem:[#allocation2] sm:$0xff]  ;;  %v152_v31 = vld [vmem:[#allocation5 + $0x10] sm:$0xff] }
  0x16   :  { %215 = vmatpush.msra.mxu1 %v161_v9  ;;  %v1157_v29 = vld [vmem:[#allocation2 + $0x18] sm:$0xff]  ;;  %v293_v32 = vld [vmem:[#allocation5 + $0x200] sm:$0xff]  ;;  %v137_v33 = vrot.slane %v1155_v28, 7  ;;  %v167_v37 = vld [vmem:[#allocation5 + $0x88] sm:$0xff] }
  0x17   :  { %187 = vmatpush.msra.mxu0 %v176_v10  ;;  %v140_v35 = vrot.slane %v1157_v29, 7  ;;  %v292_v36 = vld [vmem:[#allocation5 + $0x1f8] sm:$0xff]  ;;  %v151_v38 = vld [vmem:[#allocation5 + $0x8] sm:$0xff]  ;;  %294 = vmatpush.msra.mxu2 %v293_v32  ;;  %v291_v39 = vld [vmem:[#allocation5 + $0x1f0] sm:$0xff] }
  0x18   :  { %216 = vmatpush.msra.mxu1 %v160_v11  ;;  %v166_v40 = vld [vmem:[#allocation5 + $0x80] sm:$0xff]  ;;  %v1168_v43 = vld [vmem:[#allocation2 + $0x8] sm:$0xff]  ;;  %v288_v47 = vld [vmem:[#allocation5 + $0x1d8] sm:$0xff] }
  0x19   :  { %188 = vmatpush.msra.mxu0 %v175_v12  ;;  %v150_v41 = vld [vmem:[#allocation5] sm:$0xff]  ;;  %295 = vmatpush.msra.mxu2 %v292_v36  ;;  %v145_v42 = vsel %vm141_vm0, %v140_v35, %v137_v33  ;;  %v290_v44 = vld [vmem:[#allocation5 + $0x1e8] sm:$0xff]  ;;  %v138_v46 = vrot.slane %v1168_v43, 7  ;;  %v287_v48 = vld [vmem:[#allocation5 + $0x1d0] sm:$0xff] }
  0x1a   :  { %217 = vmatpush.msra.mxu1 %v159_v13  ;;  %v289_v45 = vld [vmem:[#allocation5 + $0x1e0] sm:$0xff]  ;;  %v1177_v51 = vld [vmem:[#allocation2 + $0x10] sm:$0xff]  ;;  %v286_v52 = vld [vmem:[#allocation5 + $0x1c8] sm:$0xff] }
  0x1b   :  { %189 = vmatpush.msra.mxu0 %v174_v14  ;;  %296 = vmatpush.msra.mxu2 %v291_v39  ;;  %v144_v49 = vsel %vm141_vm0, %v137_v33, %v138_v46  ;;  %v285_v53 = vld [vmem:[#allocation5 + $0x1c0] sm:$0xff]  ;;  %v139_v54 = vrot.slane %v1177_v51, 7  ;;  %v284_v56 = vld [vmem:[#allocation5 + $0x1b8] sm:$0xff]  ;;  %v283_v57 = vld [vmem:[#allocation5 + $0x1b0] sm:$0xff] }
  0x1c   :  { %218 = vmatpush.msra.mxu1 %v158_v15  ;;  %v282_v59 = vld [vmem:[#allocation5 + $0x1a8] sm:$0xff]  ;;  %v281_v61 = vld [vmem:[#allocation5 + $0x1a0] sm:$0xff]  ;;  %v280_v62 = vld [vmem:[#allocation5 + $0x198] sm:$0xff] }
  0x1d   :  { %190 = vmatpush.msra.mxu0 %v173_v16  ;;  %297 = vmatpush.msra.mxu2 %v290_v44  ;;  %v143_v58 = vsel %vm141_vm0, %v138_v46, %v139_v54  ;;  %v142_v60 = vsel %vm141_vm0, %v139_v54, %v140_v35  ;;  %v277_v63 = vld [vmem:[#allocation5 + $0x180] sm:$0xff]  ;;  %v279_v0 = vld [vmem:[#allocation5 + $0x190] sm:$0xff]  ;;  %v276_v1 = vld [vmem:[#allocation5 + $0x178] sm:$0xff] }
  0x1e   :  { %219 = vmatpush.msra.mxu1 %v157_v17  ;;  %323 = vmatpush.msra.mxu3 %v277_v63  ;;  %v278_v2 = vld [vmem:[#allocation5 + $0x188] sm:$0xff]  ;;  %v275_v3 = vld [vmem:[#allocation5 + $0x170] sm:$0xff]  ;;  %v273_v5 = vld [vmem:[#allocation5 + $0x160] sm:$0xff] }
  0x1f   :  { %191 = vmatpush.msra.mxu0 %v172_v18  ;;  %298 = vmatpush.msra.mxu2 %v289_v45  ;;  %v274_v4 = vld [vmem:[#allocation5 + $0x168] sm:$0xff]  ;;  %v272_v7 = vld [vmem:[#allocation5 + $0x158] sm:$0xff]  ;;  %v376_v8 = vld [vmem:[#allocation5 + $0x280] sm:$0xff] }
  0x20   :  { %220 = vmatpush.msra.mxu1 %v156_v19  ;;  %324 = vmatpush.msra.mxu3 %v276_v1  ;;  %v377_v6 = vld [vmem:[#allocation5 + $0x288] sm:$0xff]  ;;  %v271_v9 = vld [vmem:[#allocation5 + $0x150] sm:$0xff]  ;;  %v375_v10 = vld [vmem:[#allocation5 + $0x278] sm:$0xff] }
  0x21   :  { %192 = vmatpush.msra.mxu0 %v171_v21  ;;  %299 = vmatpush.msra.mxu2 %v288_v47  ;;  %v270_v11 = vld [vmem:[#allocation5 + $0x148] sm:$0xff]  ;;  %v374_v12 = vld [vmem:[#allocation5 + $0x270] sm:$0xff]  ;;  %v269_v13 = vld [vmem:[#allocation5 + $0x140] sm:$0xff] }
  0x22   :  { %221 = vmatpush.msra.mxu1 %v155_v22  ;;  %325 = vmatpush.msra.mxu3 %v275_v3  ;;  %v373_v14 = vld [vmem:[#allocation5 + $0x268] sm:$0xff]  ;;  %v268_v15 = vld [vmem:[#allocation5 + $0x138] sm:$0xff]  ;;  %v372_v16 = vld [vmem:[#allocation5 + $0x260] sm:$0xff] }
  0x23   :  { %193 = vmatpush.msra.mxu0 %v170_v23  ;;  %300 = vmatpush.msra.mxu2 %v287_v48  ;;  %v267_v17 = vld [vmem:[#allocation5 + $0x130] sm:$0xff]  ;;  %v371_v18 = vld [vmem:[#allocation5 + $0x258] sm:$0xff]  ;;  %v266_v19 = vld [vmem:[#allocation5 + $0x128] sm:$0xff] }
  0x24   :  { %222 = vmatpush.msra.mxu1 %v154_v24  ;;  %326 = vmatpush.msra.mxu3 %v274_v4  ;;  %v370_v20 = vld [vmem:[#allocation5 + $0x250] sm:$0xff]  ;;  %v265_v21 = vld [vmem:[#allocation5 + $0x120] sm:$0xff]  ;;  %v369_v22 = vld [vmem:[#allocation5 + $0x248] sm:$0xff] }
  0x25   :  { %194 = vmatpush.msra.mxu0 %v169_v25  ;;  %301 = vmatpush.msra.mxu2 %v286_v52  ;;  %v264_v23 = vld [vmem:[#allocation5 + $0x118] sm:$0xff]  ;;  %v368_v24 = vld [vmem:[#allocation5 + $0x240] sm:$0xff]  ;;  %v263_v25 = vld [vmem:[#allocation5 + $0x110] sm:$0xff] }
  0x26   :  { %223 = vmatpush.msra.mxu1 %v153_v27  ;;  %327 = vmatpush.msra.mxu3 %v273_v5  ;;  %v1034_v27 = vld [vmem:[#allocation5 + $0x100] ss:$0 sm:$0xff]  ;;  %v366_v36 = vld [vmem:[#allocation5 + $0x230] sm:$0xff]  ;;  %v460_v3 = vld [vmem:[#allocation5 + $0x388] sm:$0xff] }
  0x27   :  { %195 = vmatpush.msra.mxu0 %v168_v30  ;;  %302 = vmatpush.msra.mxu2 %v285_v53  ;;  %v367_v30 = vld [vmem:[#allocation5 + $0x238] sm:$0xff]  ;;  %v364_v39 = vld [vmem:[#allocation5 + $0x220] sm:$0xff]  ;;  %v362_v46 = vld [vmem:[#allocation5 + $0x210] sm:$0xff] }
  0x28   :  { %224 = vmatpush.msra.mxu1 %v152_v31  ;;  %328 = vmatpush.msra.mxu3 %v272_v7  ;;  %v262_v31 = vld [vmem:[#allocation5 + $0x108] sm:$0xff]  ;;  %v458_v4 = vld [vmem:[#allocation5 + $0x378] sm:$0xff]  ;;  %v457_v5 = vld [vmem:[#allocation5 + $0x370] sm:$0xff] }
  0x29   :  { %196 = vmatpush.msra.mxu0 %v167_v37  ;;  %303 = vmatpush.msra.mxu2 %v284_v56  ;;  %v365_v37 = vld [vmem:[#allocation5 + $0x228] sm:$0xff]  ;;  %v455_v7 = vld [vmem:[#allocation5 + $0x360] sm:$0xff]  ;;  %v937_v55 = vld [vmem:[#allocation5 + $0x778] sm:$0xff] }
  0x2a   :  { %225 = vmatpush.msra.mxu1 %v151_v38  ;;  %329 = vmatpush.msra.mxu3 %v271_v9  ;;  %v453_v9 = vld [vmem:[#allocation5 + $0x350] sm:$0xff]  ;;  %v943_v34 = vld [vmem:[#allocation5 + $0x7a8] sm:$0xff] }
  0x2b   :  { %197 = vmatpush.msra.mxu0 %v166_v40  ;;  %304 = vmatpush.msra.mxu2 %v283_v57  ;;  %v936_v26 = vld [vmem:[#allocation5 + $0x770] sm:$0xff] }
  0x2c   :  { %226 = vmatpush.msra.mxu1 %v150_v41  ;;  %198 = vmatmul.f32.vlgmr.msra.gmra.mxu0 %v1155_v28  ;;  %v363_v41 = vld [vmem:[#allocation5 + $0x218] sm:$0xff] }
  0x2d   :  { %1001 = vmatmul.msk.f32.vlgmr.msra.gmra.mxu1 %vm101_vm1, %v145_v42  ;;  %305 = vmatpush.msra.mxu2 %v282_v59 }
  0x2e   :  { %380 = vmatpush.msrb.mxu0 %v377_v6  ;;  %330 = vmatpush.msra.mxu3 %v270_v11  ;;  %v456_v6 = vld [vmem:[#allocation5 + $0x368] sm:$0xff]  ;;  %v451_v11 = vld [vmem:[#allocation5 + $0x340] sm:$0xff] }
  0x2f   :  { %306 = vmatpush.msra.mxu2 %v281_v61 }
  0x30   :  { %381 = vmatpush.msrb.mxu0 %v376_v8  ;;  %331 = vmatpush.msra.mxu3 %v269_v13  ;;  %v454_v8 = vld [vmem:[#allocation5 + $0x358] sm:$0xff]  ;;  %v449_v13 = vld [vmem:[#allocation5 + $0x330] sm:$0xff] }
  0x31   :  { %307 = vmatpush.msra.mxu2 %v280_v62 }
  0x32   :  { %382 = vmatpush.msrb.mxu0 %v375_v10  ;;  %332 = vmatpush.msra.mxu3 %v268_v15  ;;  %v452_v10 = vld [vmem:[#allocation5 + $0x348] sm:$0xff]  ;;  %v445_v15 = vld [vmem:[#allocation5 + $0x310] sm:$0xff] }
  0x33   :  { %308 = vmatpush.msra.mxu2 %v279_v0 }
  0x34   :  { %201 = vmatmul.f32.gmra.mxu0 %v1168_v43  ;;  %333 = vmatpush.msra.mxu3 %v267_v17  ;;  %v444_v17 = vld [vmem:[#allocation5 + $0x308] sm:$0xff] }
  0x35   :  { %230 = vmatmul.f32.gmra.mxu1 %v144_v49  ;;  %309 = vmatpush.msra.mxu2 %v278_v2  ;;  %v461_v2 = vld [vmem:[#allocation5 + $0x390] sm:$0xff] }
  0x36   :  { %383 = vmatpush.msrb.mxu0 %v374_v12  ;;  %334 = vmatpush.msra.mxu3 %v266_v19  ;;  %v450_v12 = vld [vmem:[#allocation5 + $0x338] sm:$0xff]  ;;  %v443_v19 = vld [vmem:[#allocation5 + $0x300] sm:$0xff] }
  0x37   :  { %462 = vmatpush.msrb.mxu1 %v461_v2  ;;  %491 = vmatpush.msrb.mxu2 %v445_v15 }
  0x38   :  { %384 = vmatpush.msrb.mxu0 %v373_v14  ;;  %335 = vmatpush.msra.mxu3 %v265_v21  ;;  %v448_v14 = vld [vmem:[#allocation5 + $0x328] sm:$0xff]  ;;  %v441_v21 = vld [vmem:[#allocation5 + $0x2f0] sm:$0xff] }
  0x39   :  { %463 = vmatpush.msrb.mxu1 %v460_v3  ;;  %492 = vmatpush.msrb.mxu2 %v444_v17 }
  0x3a   :  { %385 = vmatpush.msrb.mxu0 %v372_v16  ;;  %336 = vmatpush.msra.mxu3 %v264_v23  ;;  %v447_v16 = vld [vmem:[#allocation5 + $0x320] sm:$0xff] }
  0x3b   :  { %493 = vmatpush.msrb.mxu2 %v443_v19  ;;  %v439_v23 = vld [vmem:[#allocation5 + $0x2e0] sm:$0xff]  ;;  %v572_v19 = vld [vmem:[#allocation5 + $0x490] sm:$0xff] }
  0x3c   :  { %204 = vmatmul.f32.gmra.mxu0 %v1177_v51  ;;  %337 = vmatpush.msra.mxu3 %v263_v25  ;;  %v437_v25 = vld [vmem:[#allocation5 + $0x2d0] sm:$0xff] }
  0x3d   :  { %1002 = vmatmul.msk.f32.gmra.mxu1 %vm103_vm2, %v143_v58  ;;  %386 = vmatpush.msrb.mxu0 %v371_v18  ;;  %v446_v18 = vld [vmem:[#allocation5 + $0x318] sm:$0xff] }
  0x3e   :  { %338 = vmatpush.msra.mxu3 %v262_v31 }
  0x3f   :  { %387 = vmatpush.msrb.mxu0 %v370_v20  ;;  %v442_v20 = vld [vmem:[#allocation5 + $0x2f8] sm:$0xff] }
  0x40   :  { %494 = vmatpush.msrb.mxu2 %v442_v20  ;;  %v571_v20 = vld [vmem:[#allocation5 + $0x488] sm:$0xff] }
  0x41   :  { %388 = vmatpush.msrb.mxu0 %v369_v22  ;;  %v440_v22 = vld [vmem:[#allocation5 + $0x2e8] sm:$0xff] }
  0x42   :  { %495 = vmatpush.msrb.mxu2 %v441_v21  ;;  %v570_v21 = vld [vmem:[#allocation5 + $0x480] sm:$0xff] }
  0x43   :  { %389 = vmatpush.msrb.mxu0 %v368_v24  ;;  %v438_v24 = vld [vmem:[#allocation5 + $0x2d8] sm:$0xff] }
  0x44   :  { %207 = vmatmul.f32.gmra.mxu0 %v1157_v29  ;;  %496 = vmatpush.msrb.mxu2 %v440_v22  ;;  %v569_v22 = vld [vmem:[#allocation5 + $0x478] sm:$0xff] }
  0x45   :  { %236 = vmatmul.f32.gmra.mxu1 %v142_v60  ;;  %390 = vmatpush.msrb.mxu0 %v367_v30 }
  0x46   :  { %497 = vmatpush.msrb.mxu2 %v439_v23  ;;  %v568_v23 = vld [vmem:[#allocation5 + $0x470] sm:$0xff] }
  0x47   :  { %391 = vmatpush.msrb.mxu0 %v366_v36  ;;  %v1035_v36 = vld [vmem:[#allocation5 + $0x208] ss:$0 sm:$0xff] }
  0x48   :  { %498 = vmatpush.msrb.mxu2 %v438_v24  ;;  %v567_v24 = vld [vmem:[#allocation5 + $0x468] sm:$0xff] }
  0x49   :  { %392 = vmatpush.msrb.mxu0 %v365_v37  ;;  %v1036_v37 = vld [vmem:[#allocation5 + $0x290] ss:$0 sm:$0xff] }
  0x4a   :  { %499 = vmatpush.msrb.mxu2 %v437_v25  ;;  %v566_v25 = vld [vmem:[#allocation5 + $0x460] sm:$0xff] }
  0x4b   :  { %393 = vmatpush.msrb.mxu0 %v364_v39  ;;  %v432_v39 = vld [vmem:[#allocation5 + $0x2a8] sm:$0xff] }
  0x4d   :  { %394 = vmatpush.msrb.mxu0 %v363_v41  ;;  %v431_v41 = vld [vmem:[#allocation5 + $0x2a0] sm:$0xff] }
  0x4f   :  { %395 = vmatpush.msrb.mxu0 %v362_v46  ;;  %v430_v46 = vld [vmem:[#allocation5 + $0x298] sm:$0xff] }
  0x50   :  { %396 = vmatmul.f32.vlgmr.msrb.gmra.mxu0 %v1155_v28 }
  0x58   :  { %399 = vmatmul.f32.gmra.mxu0 %v1168_v43 }
  0x60   :  { %402 = vmatmul.f32.gmra.mxu0 %v1177_v51 }
  0x68   :  { %405 = vmatmul.f32.gmra.mxu0 %v1157_v29  ;;  %v459_v29 = vld [vmem:[#allocation5 + $0x380] sm:$0xff] }
  0x69   :  { %464 = vmatpush.msrb.mxu1 %v459_v29 }
  0x6b   :  { %465 = vmatpush.msrb.mxu1 %v458_v4 }
  0x6d   :  { %466 = vmatpush.msrb.mxu1 %v457_v5 }
  0x6f   :  { %467 = vmatpush.msrb.mxu1 %v456_v6 }
  0x71   :  { %468 = vmatpush.msrb.mxu1 %v455_v7 }
  0x73   :  { %469 = vmatpush.msrb.mxu1 %v454_v8 }
  0x75   :  { %470 = vmatpush.msrb.mxu1 %v453_v9 }
  0x77   :  { %471 = vmatpush.msrb.mxu1 %v452_v10 }
  0x79   :  { %472 = vmatpush.msrb.mxu1 %v451_v11 }
  0x7b   :  { %473 = vmatpush.msrb.mxu1 %v450_v12 }
  0x7d   :  { %474 = vmatpush.msrb.mxu1 %v449_v13 }
  0x7f   :  { %475 = vmatpush.msrb.mxu1 %v448_v14 }
  0x81   :  { %476 = vmatpush.msrb.mxu1 %v447_v16 }
  0x83   :  { %477 = vmatpush.msrb.mxu1 %v446_v18  ;;  %v573_v18 = vld [vmem:[#allocation5 + $0x498] sm:$0xff] }
  0x84   :  { %574 = vmatpush.msrb.mxu3 %v573_v18 }
  0x86   :  { %575 = vmatpush.msrb.mxu3 %v572_v19 }
  0x88   :  { %576 = vmatpush.msrb.mxu3 %v571_v20 }
  0x8a   :  { %577 = vmatpush.msrb.mxu3 %v570_v21 }
  0x8c   :  { %578 = vmatpush.msrb.mxu3 %v569_v22  ;;  %v694_v22 = vld [vmem:[#allocation5 + $0x5a0] sm:$0xff] }
  0x8d   :  { %695 = vmatpush.msra.mxu1 %v694_v22 }
  0x8e   :  { %579 = vmatpush.msrb.mxu3 %v568_v23  ;;  %v693_v23 = vld [vmem:[#allocation5 + $0x598] sm:$0xff] }
  0x8f   :  { %696 = vmatpush.msra.mxu1 %v693_v23 }
  0x90   :  { %580 = vmatpush.msrb.mxu3 %v567_v24  ;;  %v692_v24 = vld [vmem:[#allocation5 + $0x590] sm:$0xff] }
  0x91   :  { %697 = vmatpush.msra.mxu1 %v692_v24 }
  0x92   :  { %581 = vmatpush.msrb.mxu3 %v566_v25  ;;  %v691_v25 = vld [vmem:[#allocation5 + $0x588] sm:$0xff] }
  0x93   :  { %698 = vmatpush.msra.mxu1 %v691_v25 }
  0xa9   :  { %v199_v32 = vpop.f32.mrf.mxu0 }
  0xaa   :  { %v228_v33 = vpop.f32.mrf.mxu1 }
  0xab   :  { %v229_v35 = vadd.f32 %v228_v33, %v199_v32  ;;  %v435_v32 = vld [vmem:[#allocation5 + $0x2c0] sm:$0xff]  ;;  %v434_v33 = vld [vmem:[#allocation5 + $0x2b8] sm:$0xff] }
  0xad   :  { %v242_v38 = vadd.f32 %v1034_v27, %v229_v35  ;;  %v433_v35 = vld [vmem:[#allocation5 + $0x2b0] sm:$0xff] }
  0xaf   :  { %v246_v40 = vmax.f32 %v242_v38, 0.0 }
  0xb1   :  { %310 = vmatmul.f32.vlgmr.msra.gmra.mxu2 %v246_v40  ;;  %v202_v42 = vpop.f32.mrf.mxu0  ;;  %v250_v61 = vrot.slane %v246_v40, 7 }
  0xb2   :  { %v231_v44 = vpop.f32.mrf.mxu1 }
  0xb3   :  { %v232_v45 = vadd.f32 %v231_v44, %v202_v42 }
  0xb5   :  { %v243_v47 = vadd.f32 %v1034_v27, %v232_v45 }
  0xb7   :  { %v247_v48 = vmax.f32 %v243_v47, 0.0 }
  0xb9   :  { %313 = vmatmul.f32.gmra.mxu2 %v247_v48  ;;  %v205_v49 = vpop.f32.mrf.mxu0  ;;  %v251_v43 = vrot.slane %v247_v48, 7 }
  0xba   :  { %v234_v50 = vpop.f32.mrf.mxu1 }
  0xbb   :  { %v235_v52 = vadd.f32 %v234_v50, %v205_v49  ;;  %v256_v63 = vsel %vm141_vm0, %v250_v61, %v251_v43 }
  0xbd   :  { %v244_v53 = vadd.f32 %v1034_v27, %v235_v52 }
  0xbf   :  { %v248_v54 = vmax.f32 %v244_v53, 0.0 }
  0xc1   :  { %316 = vmatmul.f32.gmra.mxu2 %v248_v54  ;;  %v208_v56 = vpop.f32.mrf.mxu0  ;;  %v252_v0 = vrot.slane %v248_v54, 7 }
  0xc2   :  { %v237_v57 = vpop.f32.mrf.mxu1 }
  0xc3   :  { %v238_v58 = vadd.f32 %v237_v57, %v208_v56  ;;  %v255_v51 = vsel %vm141_vm0, %v251_v43, %v252_v0 }
  0xc5   :  { %v245_v59 = vadd.f32 %v1034_v27, %v238_v58  ;;  %v436_v27 = vld [vmem:[#allocation5 + $0x2c8] sm:$0xff] }
  0xc6   :  { %500 = vmatpush.msrb.mxu2 %v436_v27  ;;  %v565_v27 = vld [vmem:[#allocation5 + $0x458] sm:$0xff] }
  0xc7   :  { %v249_v60 = vmax.f32 %v245_v59, 0.0  ;;  %582 = vmatpush.msrb.mxu3 %v565_v27  ;;  %v690_v27 = vld [vmem:[#allocation5 + $0x580] sm:$0xff] }
  0xc8   :  { %501 = vmatpush.msrb.mxu2 %v435_v32  ;;  %v562_v32 = vld [vmem:[#allocation5 + $0x440] sm:$0xff]  ;;  %699 = vmatpush.msra.mxu1 %v690_v27 }
  0xc9   :  { %v253_v62 = vrot.slane %v249_v60, 7  ;;  %319 = vmatmul.f32.gmra.mxu2 %v249_v60 }
  0xca   :  { %502 = vmatpush.msrb.mxu2 %v434_v33  ;;  %v561_v33 = vld [vmem:[#allocation5 + $0x438] sm:$0xff] }
  0xcb   :  { %v257_v28 = vsel %vm141_vm0, %v253_v62, %v250_v61  ;;  %v254_v1 = vsel %vm141_vm0, %v252_v0, %v253_v62 }
  0xcc   :  { %1003 = vmatmul.msk.f32.vlgmr.msra.gmra.mxu3 %vm101_vm1, %v257_v28  ;;  %503 = vmatpush.msrb.mxu2 %v433_v35  ;;  %v560_v35 = vld [vmem:[#allocation5 + $0x430] sm:$0xff] }
  0xcd   :  { %v397_v30 = vpop.f32.mrf.mxu0 }
  0xce   :  { %504 = vmatpush.msrb.mxu2 %v432_v39  ;;  %v398_v44 = vadd.f32 %v1036_v37, %v397_v30  ;;  %v564_v30 = vld [vmem:[#allocation5 + $0x450] sm:$0xff]  ;;  %v558_v39 = vld [vmem:[#allocation5 + $0x420] sm:$0xff] }
  0xcf   :  { %583 = vmatpush.msrb.mxu3 %v564_v30  ;;  %v689_v30 = vld [vmem:[#allocation5 + $0x578] sm:$0xff] }
  0xd0   :  { %505 = vmatpush.msrb.mxu2 %v431_v41  ;;  %v554_v41 = vld [vmem:[#allocation5 + $0x400] sm:$0xff]  ;;  %700 = vmatpush.msra.mxu1 %v689_v30 }
  0xd2   :  { %506 = vmatpush.msrb.mxu2 %v430_v46  ;;  %v550_v46 = vld [vmem:[#allocation5 + $0x3e0] sm:$0xff] }
  0xd4   :  { %342 = vmatmul.f32.gmra.mxu3 %v256_v63 }
  0xd5   :  { %v400_v45 = vpop.f32.mrf.mxu0 }
  0xd6   :  { %v401_v56 = vadd.f32 %v1036_v37, %v400_v45  ;;  %v551_v45 = vld [vmem:[#allocation5 + $0x3e8] sm:$0xff] }
  0xdc   :  { %1004 = vmatmul.msk.f32.gmra.mxu3 %vm103_vm2, %v255_v51 }
  0xdd   :  { %v403_v58 = vpop.f32.mrf.mxu0 }
  0xde   :  { %v404_v63 = vadd.f32 %v1036_v37, %v403_v58  ;;  %v1037_v58 = vld [vmem:[#allocation5 + $0x398] ss:$0 sm:$0xff] }
  0xe4   :  { %348 = vmatmul.f32.gmra.mxu3 %v254_v1 }
  0xe5   :  { %v406_v1 = vpop.f32.mrf.mxu0 }
  0xe6   :  { %v407_v6 = vadd.f32 %v1036_v37, %v406_v1  ;;  %v559_v37 = vld [vmem:[#allocation5 + $0x428] sm:$0xff] }
 0x134   :  { %v311_v31 = vpop.f32.mrf.mxu2 }
 0x13c   :  { %v314_v47 = vpop.f32.mrf.mxu2 }
 0x144   :  { %v317_v59 = vpop.f32.mrf.mxu2 }
 0x14c   :  { %v320_v2 = vpop.f32.mrf.mxu2 }
 0x14f   :  { %v340_v38 = vpop.f32.mrf.mxu3 }
 0x150   :  { %v341_v40 = vadd.f32 %v340_v38, %v311_v31  ;;  %v563_v31 = vld [vmem:[#allocation5 + $0x448] sm:$0xff]  ;;  %v556_v38 = vld [vmem:[#allocation5 + $0x410] sm:$0xff] }
 0x151   :  { %584 = vmatpush.msrb.mxu3 %v563_v31  ;;  %v688_v31 = vld [vmem:[#allocation5 + $0x570] sm:$0xff] }
 0x152   :  { %v354_v42 = vadd.f32 %v1035_v36, %v341_v40  ;;  %v555_v40 = vld [vmem:[#allocation5 + $0x408] sm:$0xff]  ;;  %701 = vmatpush.msra.mxu1 %v688_v31 }
 0x153   :  { %585 = vmatpush.msrb.mxu3 %v562_v32  ;;  %v687_v32 = vld [vmem:[#allocation5 + $0x568] sm:$0xff] }
 0x154   :  { %v358_v48 = vmax.f32 %v354_v42, 0.0  ;;  %v553_v42 = vld [vmem:[#allocation5 + $0x3f8] sm:$0xff]  ;;  %702 = vmatpush.msra.mxu1 %v687_v32 }
 0x155   :  { %586 = vmatpush.msrb.mxu3 %v561_v33  ;;  %v686_v33 = vld [vmem:[#allocation5 + $0x560] sm:$0xff] }
 0x156   :  { %v409_v49 = vadd.f32 %v398_v44, %v358_v48  ;;  %v552_v44 = vld [vmem:[#allocation5 + $0x3f0] sm:$0xff]  ;;  %703 = vmatpush.msra.mxu1 %v686_v33 }
 0x157   :  { %v343_v50 = vpop.f32.mrf.mxu3  ;;  %587 = vmatpush.msrb.mxu3 %v560_v35  ;;  %v548_v48 = vld [vmem:[#allocation5 + $0x3d0] sm:$0xff]  ;;  %v685_v35 = vld [vmem:[#allocation5 + $0x558] sm:$0xff] }
 0x158   :  { %v1208_v52 = vmax.f32 %v409_v49, 0.0  ;;  %v344_v53 = vadd.f32 %v343_v50, %v314_v47  ;;  %v549_v47 = vld [vmem:[#allocation5 + $0x3d8] sm:$0xff]  ;;  %v547_v49 = vld [vmem:[#allocation5 + $0x3c8] sm:$0xff]  ;;  %v546_v50 = vld [vmem:[#allocation5 + $0x3c0] sm:$0xff]  ;;  %704 = vmatpush.msra.mxu1 %v685_v35 }
 0x159   :  { %588 = vmatpush.msrb.mxu3 %v559_v37  ;;  %v683_v37 = vld [vmem:[#allocation5 + $0x548] sm:$0xff] }
 0x15a   :  { %v355_v54 = vadd.f32 %v1035_v36, %v344_v53  ;;  %478 = vmatmul.f32.vlgmr.msrb.gmra.mxu1 %v1208_v52  ;;  %v417_v10 = vrot.slane %v1208_v52, 6  ;;  %v545_v53 = vld [vmem:[#allocation5 + $0x3b8] sm:$0xff] }
 0x15b   :  { %589 = vmatpush.msrb.mxu3 %v558_v39  ;;  %v681_v39 = vld [vmem:[#allocation5 + $0x538] sm:$0xff] }
 0x15c   :  { %v359_v57 = vmax.f32 %v355_v54, 0.0 }
 0x15e   :  { %v410_v60 = vadd.f32 %v401_v56, %v359_v57  ;;  %v544_v56 = vld [vmem:[#allocation5 + $0x3b0] sm:$0xff]  ;;  %v543_v57 = vld [vmem:[#allocation5 + $0x3a8] sm:$0xff] }
 0x15f   :  { %v346_v61 = vpop.f32.mrf.mxu3 }
 0x160   :  { %v1211_v62 = vmax.f32 %v410_v60, 0.0  ;;  %v347_v28 = vadd.f32 %v346_v61, %v317_v59  ;;  %v542_v59 = vld [vmem:[#allocation5 + $0x3a0] sm:$0xff] }
 0x162   :  { %v356_v43 = vadd.f32 %v1035_v36, %v347_v28  ;;  %481 = vmatmul.f32.gmra.mxu1 %v1211_v62  ;;  %v418_v13 = vrot.slane %v1211_v62, 6 }
 0x164   :  { %v360_v0 = vmax.f32 %v356_v43, 0.0  ;;  %v424_v14 = vsel %vm421_vm4, %v417_v10, %v418_v13 }
 0x166   :  { %v411_v51 = vadd.f32 %v404_v63, %v360_v0 }
 0x167   :  { %v349_v3 = vpop.f32.mrf.mxu3 }
 0x168   :  { %v1214_v29 = vmax.f32 %v411_v51, 0.0  ;;  %v350_v4 = vadd.f32 %v349_v3, %v320_v2 }
 0x16a   :  { %v357_v5 = vadd.f32 %v1035_v36, %v350_v4  ;;  %484 = vmatmul.f32.gmra.mxu1 %v1214_v29  ;;  %v419_v15 = vrot.slane %v1214_v29, 6  ;;  %v557_v36 = vld [vmem:[#allocation5 + $0x418] sm:$0xff] }
 0x16b   :  { %603 = vmatpush.msra.mxu0 %v557_v36  ;;  %v684_v36 = vld [vmem:[#allocation5 + $0x550] sm:$0xff] }
 0x16c   :  { %v361_v7 = vmax.f32 %v357_v5, 0.0  ;;  %v423_v16 = vsel %vm421_vm4, %v418_v13, %v419_v15  ;;  %705 = vmatpush.msra.mxu1 %v684_v36 }
 0x16d   :  { %604 = vmatpush.msra.mxu0 %v556_v38  ;;  %v682_v38 = vld [vmem:[#allocation5 + $0x540] sm:$0xff] }
 0x16e   :  { %v412_v8 = vadd.f32 %v407_v6, %v361_v7  ;;  %706 = vmatpush.msra.mxu1 %v683_v37 }
 0x16f   :  { %605 = vmatpush.msra.mxu0 %v555_v40  ;;  %v678_v40 = vld [vmem:[#allocation5 + $0x520] sm:$0xff] }
 0x170   :  { %v1217_v9 = vmax.f32 %v412_v8, 0.0  ;;  %707 = vmatpush.msra.mxu1 %v682_v38  ;;  %724 = vmatpush.msra.mxu2 %v678_v40 }
 0x171   :  { %606 = vmatpush.msra.mxu0 %v554_v41  ;;  %v680_v41 = vld [vmem:[#allocation5 + $0x530] sm:$0xff] }
 0x172   :  { %v420_v11 = vrot.slane %v1217_v9, 6  ;;  %487 = vmatmul.f32.gmra.mxu1 %v1217_v9 }
 0x173   :  { %607 = vmatpush.msra.mxu0 %v553_v42  ;;  %708 = vmatpush.msra.mxu1 %v681_v39  ;;  %v677_v42 = vld [vmem:[#allocation5 + $0x518] sm:$0xff] }
 0x174   :  { %v425_v12 = vsel %vm421_vm4, %v420_v11, %v417_v10  ;;  %v422_v17 = vsel %vm421_vm4, %v419_v15, %v420_v11  ;;  %725 = vmatpush.msra.mxu2 %v677_v42 }
 0x175   :  { %1005 = vmatmul.msk.f32.vlgmr.msrb.gmra.mxu2 %vm113_vm3, %v425_v12  ;;  %608 = vmatpush.msra.mxu0 %v552_v44  ;;  %v679_v44 = vld [vmem:[#allocation5 + $0x528] sm:$0xff] }
 0x176   :  { %709 = vmatpush.msra.mxu1 %v680_v41 }
 0x177   :  { %609 = vmatpush.msra.mxu0 %v551_v45  ;;  %v676_v45 = vld [vmem:[#allocation5 + $0x510] sm:$0xff] }
 0x178   :  { %710 = vmatpush.msra.mxu1 %v679_v44  ;;  %726 = vmatpush.msra.mxu2 %v676_v45 }
 0x179   :  { %610 = vmatpush.msra.mxu0 %v550_v46  ;;  %v890_v46 = vld [vmem:[#allocation5 + $0x730] sm:$0xff] }
 0x17a   :  { %893 = vmatpush.msrb.mxu1 %v890_v46 }
 0x17b   :  { %611 = vmatpush.msra.mxu0 %v549_v47  ;;  %v675_v47 = vld [vmem:[#allocation5 + $0x508] sm:$0xff] }
 0x17c   :  { %727 = vmatpush.msra.mxu2 %v675_v47 }
 0x17d   :  { %510 = vmatmul.f32.gmra.mxu2 %v424_v14  ;;  %612 = vmatpush.msra.mxu0 %v548_v48  ;;  %v674_v48 = vld [vmem:[#allocation5 + $0x500] sm:$0xff] }
 0x17e   :  { %728 = vmatpush.msra.mxu2 %v674_v48 }
 0x17f   :  { %613 = vmatpush.msra.mxu0 %v547_v49  ;;  %v889_v49 = vld [vmem:[#allocation5 + $0x728] sm:$0xff] }
 0x180   :  { %894 = vmatpush.msrb.mxu1 %v889_v49 }
 0x181   :  { %614 = vmatpush.msra.mxu0 %v546_v50  ;;  %v888_v50 = vld [vmem:[#allocation5 + $0x720] sm:$0xff] }
 0x182   :  { %895 = vmatpush.msrb.mxu1 %v888_v50 }
 0x183   :  { %615 = vmatpush.msra.mxu0 %v545_v53  ;;  %v673_v53 = vld [vmem:[#allocation5 + $0x4f8] sm:$0xff] }
 0x184   :  { %729 = vmatpush.msra.mxu2 %v673_v53  ;;  %v806_v53 = vld [vmem:[#allocation5 + $0x6a8] sm:$0xff] }
 0x185   :  { %1006 = vmatmul.msk.f32.gmra.mxu2 %vm115_vm5, %v423_v16  ;;  %616 = vmatpush.msra.mxu0 %v544_v56  ;;  %v672_v56 = vld [vmem:[#allocation5 + $0x4f0] sm:$0xff] }
 0x186   :  { %730 = vmatpush.msra.mxu2 %v672_v56  ;;  %807 = vmatpush.msra.mxu3 %v806_v53  ;;  %v804_v56 = vld [vmem:[#allocation5 + $0x698] sm:$0xff] }
 0x187   :  { %617 = vmatpush.msra.mxu0 %v543_v57  ;;  %v886_v57 = vld [vmem:[#allocation5 + $0x710] sm:$0xff]  ;;  %v945_v53 = vld [vmem:[#allocation5 + $0x7b8] sm:$0xff] }
 0x189   :  { %618 = vmatpush.msra.mxu0 %v542_v59  ;;  %v670_v59 = vld [vmem:[#allocation5 + $0x4e0] sm:$0xff] }
 0x18d   :  { %516 = vmatmul.f32.gmra.mxu2 %v422_v17 }
 0x1d7   :  { %v479_v54 = vpop.f32.mrf.mxu1 }
 0x1df   :  { %v482_v43 = vpop.f32.mrf.mxu1 }
 0x1e7   :  { %v485_v3 = vpop.f32.mrf.mxu1 }
 0x1ef   :  { %v488_v8 = vpop.f32.mrf.mxu1 }
 0x1f8   :  { %v508_v60 = vpop.f32.mrf.mxu2 }
 0x1f9   :  { %v509_v61 = vadd.f32 %v508_v60, %v479_v54  ;;  %v887_v54 = vld [vmem:[#allocation5 + $0x718] sm:$0xff]  ;;  %v885_v60 = vld [vmem:[#allocation5 + $0x708] sm:$0xff] }
 0x1fa   :  { %896 = vmatpush.msrb.mxu1 %v887_v54  ;;  %v805_v54 = vld [vmem:[#allocation5 + $0x6a0] sm:$0xff] }
 0x1fb   :  { %v522_v28 = vadd.f32 %v1037_v58, %v509_v61  ;;  %v884_v61 = vld [vmem:[#allocation5 + $0x700] sm:$0xff]  ;;  %808 = vmatpush.msra.mxu3 %v805_v54  ;;  %v944_v54 = vld [vmem:[#allocation5 + $0x7b0] sm:$0xff] }
 0x1fc   :  { %897 = vmatpush.msrb.mxu1 %v886_v57  ;;  %v803_v57 = vld [vmem:[#allocation5 + $0x690] sm:$0xff] }
 0x1fd   :  { %v526_v63 = vmax.f32 %v522_v28, 0.0  ;;  %v669_v28 = vld [vmem:[#allocation5 + $0x4d8] sm:$0xff]  ;;  %809 = vmatpush.msra.mxu3 %v804_v56  ;;  %v942_v56 = vld [vmem:[#allocation5 + $0x7a0] sm:$0xff] }
 0x1fe   :  { %898 = vmatpush.msrb.mxu1 %v885_v60  ;;  %v800_v60 = vld [vmem:[#allocation5 + $0x678] sm:$0xff] }
 0x1ff   :  { %590 = vmatmul.f32.vlgmr.msrb.gmra.mxu3 %v526_v63  ;;  %v530_v14 = vrot.slane %v526_v63, 6 }
 0x200   :  { %v511_v0 = vpop.f32.mrf.mxu2  ;;  %899 = vmatpush.msrb.mxu1 %v884_v61  ;;  %810 = vmatpush.msra.mxu3 %v803_v57  ;;  %v799_v61 = vld [vmem:[#allocation5 + $0x670] sm:$0xff]  ;;  %v941_v57 = vld [vmem:[#allocation5 + $0x798] sm:$0xff] }
 0x201   :  { %v512_v51 = vadd.f32 %v511_v0, %v482_v43  ;;  %v883_v43 = vld [vmem:[#allocation5 + $0x6f8] sm:$0xff]  ;;  %v668_v0 = vld [vmem:[#allocation5 + $0x4d0] sm:$0xff] }
 0x202   :  { %900 = vmatpush.msrb.mxu1 %v883_v43  ;;  %v797_v43 = vld [vmem:[#allocation5 + $0x660] sm:$0xff] }
 0x203   :  { %v523_v1 = vadd.f32 %v1037_v58, %v512_v51  ;;  %v882_v51 = vld [vmem:[#allocation5 + $0x6f0] sm:$0xff] }
 0x204   :  { %901 = vmatpush.msrb.mxu1 %v882_v51  ;;  %v794_v51 = vld [vmem:[#allocation5 + $0x648] sm:$0xff] }
 0x205   :  { %v527_v2 = vmax.f32 %v523_v1, 0.0  ;;  %v667_v1 = vld [vmem:[#allocation5 + $0x4c8] sm:$0xff] }
 0x207   :  { %593 = vmatmul.f32.gmra.mxu3 %v527_v2  ;;  %v531_v17 = vrot.slane %v527_v2, 6  ;;  %v666_v2 = vld [vmem:[#allocation5 + $0x4c0] sm:$0xff] }
 0x208   :  { %v514_v4 = vpop.f32.mrf.mxu2 }
 0x209   :  { %v515_v5 = vadd.f32 %v514_v4, %v485_v3  ;;  %v536_v18 = vsel %vm421_vm4, %v530_v14, %v531_v17  ;;  %v881_v3 = vld [vmem:[#allocation5 + $0x6e8] sm:$0xff]  ;;  %v665_v4 = vld [vmem:[#allocation5 + $0x4b8] sm:$0xff] }
 0x20a   :  { %902 = vmatpush.msrb.mxu1 %v881_v3  ;;  %v792_v3 = vld [vmem:[#allocation5 + $0x638] sm:$0xff] }
 0x20b   :  { %v524_v6 = vadd.f32 %v1037_v58, %v515_v5  ;;  %v880_v5 = vld [vmem:[#allocation5 + $0x6e0] sm:$0xff] }
 0x20c   :  { %903 = vmatpush.msrb.mxu1 %v880_v5  ;;  %v791_v5 = vld [vmem:[#allocation5 + $0x630] sm:$0xff] }
 0x20d   :  { %v528_v7 = vmax.f32 %v524_v6, 0.0  ;;  %v1038_v6 = vld [vmem:[#allocation5 + $0x4a0] ss:$0 sm:$0xff] }
 0x20f   :  { %596 = vmatmul.f32.gmra.mxu3 %v528_v7  ;;  %v532_v19 = vrot.slane %v528_v7, 6  ;;  %v879_v7 = vld [vmem:[#allocation5 + $0x6d8] sm:$0xff] }
 0x210   :  { %v517_v10 = vpop.f32.mrf.mxu2  ;;  %904 = vmatpush.msrb.mxu1 %v879_v7  ;;  %v787_v7 = vld [vmem:[#allocation5 + $0x610] sm:$0xff] }
 0x211   :  { %v518_v11 = vadd.f32 %v517_v10, %v488_v8  ;;  %v535_v20 = vsel %vm421_vm4, %v531_v17, %v532_v19  ;;  %v664_v10 = vld [vmem:[#allocation5 + $0x4b0] sm:$0xff]  ;;  %v877_v17 = vld [vmem:[#allocation5 + $0x6c8] sm:$0xff] }
 0x213   :  { %v525_v12 = vadd.f32 %v1037_v58, %v518_v11  ;;  %v671_v58 = vld [vmem:[#allocation5 + $0x4e8] sm:$0xff] }
 0x214   :  { %731 = vmatpush.msra.mxu2 %v671_v58  ;;  %v802_v58 = vld [vmem:[#allocation5 + $0x688] sm:$0xff] }
 0x215   :  { %v529_v13 = vmax.f32 %v525_v12, 0.0  ;;  %811 = vmatpush.msra.mxu3 %v802_v58  ;;  %v940_v58 = vld [vmem:[#allocation5 + $0x790] sm:$0xff] }
 0x216   :  { %732 = vmatpush.msra.mxu2 %v670_v59  ;;  %v801_v59 = vld [vmem:[#allocation5 + $0x680] sm:$0xff] }
 0x217   :  { %v533_v15 = vrot.slane %v529_v13, 6  ;;  %599 = vmatmul.f32.gmra.mxu3 %v529_v13  ;;  %v663_v13 = vld [vmem:[#allocation5 + $0x4a8] sm:$0xff] }
 0x218   :  { %733 = vmatpush.msra.mxu2 %v669_v28  ;;  %812 = vmatpush.msra.mxu3 %v801_v59  ;;  %v798_v28 = vld [vmem:[#allocation5 + $0x668] sm:$0xff] }
 0x219   :  { %v537_v16 = vsel %vm421_vm4, %v533_v15, %v530_v14  ;;  %v534_v21 = vsel %vm421_vm4, %v532_v19, %v533_v15  ;;  %v878_v14 = vld [vmem:[#allocation5 + $0x6d0] sm:$0xff]  ;;  %v939_v59 = vld [vmem:[#allocation5 + $0x788] sm:$0xff] }
 0x21a   :  { %1007 = vmatmul.msk.f32.vlgmr.msra.gmra.mxu0 %vm113_vm3, %v537_v16  ;;  %734 = vmatpush.msra.mxu2 %v668_v0  ;;  %v795_v0 = vld [vmem:[#allocation5 + $0x650] sm:$0xff] }
 0x21b   :  { %905 = vmatpush.msrb.mxu1 %v878_v14  ;;  %813 = vmatpush.msra.mxu3 %v800_v60  ;;  %v781_v14 = vld [vmem:[#allocation5 + $0x5e0] sm:$0xff] }
 0x21c   :  { %735 = vmatpush.msra.mxu2 %v667_v1  ;;  %v793_v1 = vld [vmem:[#allocation5 + $0x640] sm:$0xff] }
 0x21d   :  { %906 = vmatpush.msrb.mxu1 %v877_v17  ;;  %814 = vmatpush.msra.mxu3 %v799_v61  ;;  %v778_v17 = vld [vmem:[#allocation5 + $0x5c8] sm:$0xff]  ;;  %v938_v60 = vld [vmem:[#allocation5 + $0x780] sm:$0xff] }
 0x21e   :  { %736 = vmatpush.msra.mxu2 %v666_v2  ;;  %v790_v2 = vld [vmem:[#allocation5 + $0x628] sm:$0xff] }
 0x21f   :  { %815 = vmatpush.msra.mxu3 %v798_v28  ;;  %836 = vmatpush.msrb.mxu0 %v790_v2  ;;  %v935_v61 = vld [vmem:[#allocation5 + $0x768] sm:$0xff]  ;;  %v934_v28 = vld [vmem:[#allocation5 + $0x760] sm:$0xff] }
 0x220   :  { %737 = vmatpush.msra.mxu2 %v665_v4  ;;  %v789_v4 = vld [vmem:[#allocation5 + $0x620] sm:$0xff] }
 0x221   :  { %816 = vmatpush.msra.mxu3 %v797_v43  ;;  %837 = vmatpush.msrb.mxu0 %v789_v4  ;;  %v933_v43 = vld [vmem:[#allocation5 + $0x758] sm:$0xff] }
 0x222   :  { %622 = vmatmul.f32.gmra.mxu0 %v536_v18  ;;  %738 = vmatpush.msra.mxu2 %v664_v10  ;;  %v876_v18 = vld [vmem:[#allocation5 + $0x6c0] sm:$0xff] }
 0x223   :  { %907 = vmatpush.msrb.mxu1 %v876_v18  ;;  %v785_v10 = vld [vmem:[#allocation5 + $0x600] sm:$0xff] }
 0x224   :  { %739 = vmatpush.msra.mxu2 %v663_v13  ;;  %v782_v13 = vld [vmem:[#allocation5 + $0x5e8] sm:$0xff] }
 0x226   :  { %948 = vmatpush.msrb.mxu2 %v945_v53 }
 0x228   :  { %949 = vmatpush.msrb.mxu2 %v944_v54 }
 0x22a   :  { %1008 = vmatmul.msk.f32.gmra.mxu0 %vm115_vm5, %v535_v20  ;;  %v875_v20 = vld [vmem:[#allocation5 + $0x6b8] sm:$0xff]  ;;  %950 = vmatpush.msrb.mxu2 %v943_v34 }
 0x22b   :  { %908 = vmatpush.msrb.mxu1 %v875_v20  ;;  %v776_v20 = vld [vmem:[#allocation5 + $0x5b8] sm:$0xff] }
 0x22c   :  { %951 = vmatpush.msrb.mxu2 %v942_v56 }
 0x22e   :  { %952 = vmatpush.msrb.mxu2 %v941_v57 }
 0x230   :  { %953 = vmatpush.msrb.mxu2 %v940_v58 }
 0x232   :  { %628 = vmatmul.f32.gmra.mxu0 %v534_v21  ;;  %954 = vmatpush.msrb.mxu2 %v939_v59 }
 0x234   :  { %955 = vmatpush.msrb.mxu2 %v938_v60 }
 0x236   :  { %956 = vmatpush.msrb.mxu2 %v937_v55 }
 0x238   :  { %957 = vmatpush.msrb.mxu2 %v936_v26 }
 0x23a   :  { %958 = vmatpush.msrb.mxu2 %v935_v61 }
 0x23c   :  { %959 = vmatpush.msrb.mxu2 %v934_v28 }
 0x23e   :  { %960 = vmatpush.msrb.mxu2 %v933_v43 }
 0x282   :  { %v591_v63 = vpop.f32.mrf.mxu3 }
 0x28a   :  { %v594_v15 = vpop.f32.mrf.mxu3 }
 0x292   :  { %v597_v27 = vpop.f32.mrf.mxu3 }
 0x297   :  { %v620_v8 = vpop.f32.mrf.mxu0 }
 0x298   :  { %v621_v11 = vadd.f32 %v620_v8, %v591_v63  ;;  %v796_v63 = vld [vmem:[#allocation5 + $0x658] sm:$0xff]  ;;  %v786_v8 = vld [vmem:[#allocation5 + $0x608] sm:$0xff] }
 0x299   :  { %817 = vmatpush.msra.mxu3 %v796_v63  ;;  %v932_v63 = vld [vmem:[#allocation5 + $0x750] sm:$0xff] }
 0x29a   :  { %v634_v12 = vadd.f32 %v1038_v6, %v621_v11  ;;  %v600_v37 = vpop.f32.mrf.mxu3  ;;  %v784_v11 = vld [vmem:[#allocation5 + $0x5f8] sm:$0xff]  ;;  %961 = vmatpush.msrb.mxu2 %v932_v63 }
 0x29b   :  { %818 = vmatpush.msra.mxu3 %v795_v0  ;;  %v931_v0 = vld [vmem:[#allocation5 + $0x748] sm:$0xff] }
 0x29c   :  { %v638_v16 = vmax.f32 %v634_v12, 0.0  ;;  %v783_v12 = vld [vmem:[#allocation5 + $0x5f0] sm:$0xff]  ;;  %962 = vmatpush.msrb.mxu2 %v931_v0 }
 0x29d   :  { %819 = vmatpush.msra.mxu3 %v794_v51  ;;  %v930_v51 = vld [vmem:[#allocation5 + $0x740] sm:$0xff] }
 0x29e   :  { %v642_v19 = vadd.f32 %v638_v16, %v1208_v52  ;;  %v779_v16 = vld [vmem:[#allocation5 + $0x5d0] sm:$0xff]  ;;  %963 = vmatpush.msrb.mxu2 %v930_v51 }
 0x29f   :  { %v623_v21 = vpop.f32.mrf.mxu0  ;;  %820 = vmatpush.msra.mxu3 %v793_v1 }
 0x2a0   :  { %v646_v22 = vmax.f32 %v642_v19, 0.0  ;;  %v624_v23 = vadd.f32 %v623_v21, %v594_v15  ;;  %v780_v15 = vld [vmem:[#allocation5 + $0x5d8] sm:$0xff]  ;;  %v777_v19 = vld [vmem:[#allocation5 + $0x5c0] sm:$0xff]  ;;  %v1040_v21 = vld [vmem:[#allocation5 + $0x5a8] ss:$0 sm:$0xff] }
 0x2a1   :  { %821 = vmatpush.msra.mxu3 %v792_v3 }
 0x2a2   :  { %v635_v24 = vadd.f32 %v1038_v6, %v624_v23  ;;  %711 = vmatmul.f32.vlgmr.msra.gmra.mxu1 %v646_v22  ;;  %v650_v46 = vrot.slane %v646_v22, 4 }
 0x2a3   :  { %822 = vmatpush.msra.mxu3 %v791_v5  ;;  %v1041_v5 = vld [vmem:[#allocation5 + $0x6b0] ss:$0 sm:$0xff] }
 0x2a4   :  { %v639_v25 = vmax.f32 %v635_v24, 0.0 }
 0x2a5   :  { %1013 = vmatpush.msrb.mxu3 %v790_v2 }
 0x2a6   :  { %v643_v30 = vadd.f32 %v639_v25, %v1211_v62 }
 0x2a7   :  { %v626_v31 = vpop.f32.mrf.mxu0  ;;  %1014 = vmatpush.msrb.mxu3 %v789_v4 }
 0x2a8   :  { %v627_v32 = vadd.f32 %v626_v31, %v597_v27  ;;  %v647_v33 = vmax.f32 %v643_v30, 0.0 }
 0x2aa   :  { %v636_v35 = vadd.f32 %v1038_v6, %v627_v32  ;;  %714 = vmatmul.f32.gmra.mxu1 %v647_v33  ;;  %v651_v47 = vrot.slane %v647_v33, 4 }
 0x2ac   :  { %v640_v36 = vmax.f32 %v636_v35, 0.0  ;;  %v657_v48 = vsel %vm654_vm7, %v650_v46, %v651_v47 }
 0x2ae   :  { %v644_v52 = vadd.f32 %v640_v36, %v1214_v29 }
 0x2af   :  { %v629_v38 = vpop.f32.mrf.mxu0 }
 0x2b0   :  { %v630_v39 = vadd.f32 %v629_v38, %v600_v37  ;;  %v648_v40 = vmax.f32 %v644_v52, 0.0 }
 0x2b2   :  { %v637_v41 = vadd.f32 %v1038_v6, %v630_v39  ;;  %717 = vmatmul.f32.gmra.mxu1 %v648_v40  ;;  %v788_v6 = vld [vmem:[#allocation5 + $0x618] sm:$0xff] }
 0x2b3   :  { %838 = vmatpush.msrb.mxu0 %v788_v6  ;;  %1015 = vmatpush.msrb.mxu3 %v788_v6 }
 0x2b4   :  { %v641_v42 = vmax.f32 %v637_v41, 0.0 }
 0x2b5   :  { %839 = vmatpush.msrb.mxu0 %v787_v7  ;;  %1016 = vmatpush.msrb.mxu3 %v787_v7  ;;  %v1039_v7 = vld [vmem:[#allocation5 + $0x738] ss:$0 sm:$0xff] }
 0x2b6   :  { %v645_v44 = vadd.f32 %v641_v42, %v1217_v9  ;;  %v652_v9 = vrot.slane %v648_v40, 4 }
 0x2b7   :  { %840 = vmatpush.msrb.mxu0 %v786_v8  ;;  %1017 = vmatpush.msrb.mxu3 %v786_v8 }
 0x2b8   :  { %v649_v45 = vmax.f32 %v645_v44, 0.0  ;;  %v656_v49 = vsel %vm654_vm7, %v651_v47, %v652_v9 }
 0x2b9   :  { %841 = vmatpush.msrb.mxu0 %v785_v10  ;;  %1018 = vmatpush.msrb.mxu3 %v785_v10 }
 0x2ba   :  { %v653_v62 = vrot.slane %v649_v45, 4  ;;  %720 = vmatmul.f32.gmra.mxu1 %v649_v45 }
 0x2bb   :  { %842 = vmatpush.msrb.mxu0 %v784_v11  ;;  %1019 = vmatpush.msrb.mxu3 %v784_v11 }
 0x2bc   :  { %v658_v29 = vsel %vm654_vm7, %v653_v62, %v650_v46  ;;  %v655_v50 = vsel %vm654_vm7, %v652_v9, %v653_v62 }
 0x2bd   :  { %1009 = vmatmul.msk.f32.vlgmr.msra.gmra.mxu2 %vm125_vm6, %v658_v29  ;;  %843 = vmatpush.msrb.mxu0 %v783_v12 }
 0x2be   :  { %1020 = vmatpush.msrb.mxu3 %v783_v12 }
 0x2bf   :  { %844 = vmatpush.msrb.mxu0 %v782_v13 }
 0x2c0   :  { %1021 = vmatpush.msrb.mxu3 %v782_v13 }
 0x2c1   :  { %845 = vmatpush.msrb.mxu0 %v781_v14 }
 0x2c2   :  { %909 = vmatmul.f32.vlgmr.msrb.gmra.mxu1 %v646_v22  ;;  %1022 = vmatpush.msrb.mxu3 %v781_v14  ;;  %v775_v22 = vld [vmem:[#allocation5 + $0x5b0] sm:$0xff] }
 0x2c3   :  { %846 = vmatpush.msrb.mxu0 %v780_v15 }
 0x2c4   :  { %1023 = vmatpush.msrb.mxu3 %v780_v15 }
 0x2c5   :  { %743 = vmatmul.f32.gmra.mxu2 %v657_v48  ;;  %847 = vmatpush.msrb.mxu0 %v779_v16 }
 0x2c6   :  { %1024 = vmatpush.msrb.mxu3 %v779_v16 }
 0x2c7   :  { %848 = vmatpush.msrb.mxu0 %v778_v17 }
 0x2c8   :  { %1025 = vmatpush.msrb.mxu3 %v778_v17 }
 0x2c9   :  { %849 = vmatpush.msrb.mxu0 %v777_v19 }
 0x2ca   :  { %912 = vmatmul.f32.gmra.mxu1 %v647_v33  ;;  %1026 = vmatpush.msrb.mxu3 %v777_v19 }
 0x2cb   :  { %850 = vmatpush.msrb.mxu0 %v776_v20 }
 0x2cc   :  { %1027 = vmatpush.msrb.mxu3 %v776_v20 }
 0x2cd   :  { %1010 = vmatmul.msk.f32.gmra.mxu2 %vm127_vm8, %v656_v49  ;;  %851 = vmatpush.msrb.mxu0 %v775_v22 }
 0x2ce   :  { %1028 = vmatpush.msrb.mxu3 %v775_v22 }
 0x2d2   :  { %915 = vmatmul.f32.gmra.mxu1 %v648_v40 }
 0x2d5   :  { %749 = vmatmul.f32.gmra.mxu2 %v655_v50 }
 0x2da   :  { %918 = vmatmul.f32.gmra.mxu1 %v649_v45 }
 0x31f   :  { %v712_v18 = vpop.f32.mrf.mxu1 }
 0x327   :  { %v715_v27 = vpop.f32.mrf.mxu1 }
 0x32f   :  { %v718_v36 = vpop.f32.mrf.mxu1 }
 0x337   :  { %v721_v40 = vpop.f32.mrf.mxu1 }
 0x33f   :  { %v910_v4 = vpop.f32.mrf.mxu1 }
 0x340   :  { %v741_v23 = vpop.f32.mrf.mxu2  ;;  %v911_v12 = vadd.f32 %v1039_v7, %v910_v4 }
 0x341   :  { %v742_v24 = vadd.f32 %v741_v23, %v712_v18 }
 0x343   :  { %v755_v25 = vadd.f32 %v1040_v21, %v742_v24 }
 0x345   :  { %v759_v30 = vmax.f32 %v755_v25, 0.0 }
 0x347   :  { %823 = vmatmul.f32.vlgmr.msra.gmra.mxu3 %v759_v30  ;;  %v763_v46 = vrot.slane %v759_v30, 4  ;;  %v913_v15 = vpop.f32.mrf.mxu1 }
 0x348   :  { %v744_v31 = vpop.f32.mrf.mxu2  ;;  %v914_v20 = vadd.f32 %v1039_v7, %v913_v15 }
 0x349   :  { %v745_v32 = vadd.f32 %v744_v31, %v715_v27 }
 0x34b   :  { %v756_v33 = vadd.f32 %v1040_v21, %v745_v32 }
 0x34d   :  { %v760_v35 = vmax.f32 %v756_v33, 0.0 }
 0x34f   :  { %826 = vmatmul.f32.gmra.mxu3 %v760_v35  ;;  %v764_v47 = vrot.slane %v760_v35, 4  ;;  %v916_v23 = vpop.f32.mrf.mxu1 }
 0x350   :  { %v747_v52 = vpop.f32.mrf.mxu2  ;;  %v917_v31 = vadd.f32 %v1039_v7, %v916_v23 }
 0x351   :  { %v748_v37 = vadd.f32 %v747_v52, %v718_v36  ;;  %v769_v48 = vsel %vm654_vm7, %v763_v46, %v764_v47 }
 0x353   :  { %v757_v38 = vadd.f32 %v1040_v21, %v748_v37 }
 0x355   :  { %v761_v39 = vmax.f32 %v757_v38, 0.0 }
 0x357   :  { %829 = vmatmul.f32.gmra.mxu3 %v761_v39  ;;  %v765_v9 = vrot.slane %v761_v39, 4  ;;  %v919_v37 = vpop.f32.mrf.mxu1 }
 0x358   :  { %v750_v41 = vpop.f32.mrf.mxu2  ;;  %v920_v39 = vadd.f32 %v1039_v7, %v919_v37 }
 0x359   :  { %v751_v42 = vadd.f32 %v750_v41, %v721_v40  ;;  %v768_v49 = vsel %vm654_vm7, %v764_v47, %v765_v9 }
 0x35b   :  { %v758_v44 = vadd.f32 %v1040_v21, %v751_v42 }
 0x35d   :  { %v762_v45 = vmax.f32 %v758_v44, 0.0  ;;  %v1042_v44 = vld [vmem:[#allocation5 + $0x7c0] ss:$0 sm:$0xff] }
 0x35f   :  { %v766_v62 = vrot.slane %v762_v45, 4  ;;  %832 = vmatmul.f32.gmra.mxu3 %v762_v45 }
 0x361   :  { %v770_v29 = vsel %vm654_vm7, %v766_v62, %v763_v46  ;;  %v767_v50 = vsel %vm654_vm7, %v765_v9, %v766_v62 }
 0x362   :  { %1011 = vmatmul.msk.f32.vlgmr.msrb.gmra.mxu0 %vm125_vm6, %v770_v29 }
 0x367   :  { %855 = vmatmul.f32.vlgmr.msrb.gmra.mxu3 %v769_v48 }
 0x36f   :  { %1012 = vmatmul.msk.f32.gmra.mxu3 %vm127_vm8, %v768_v49 }
 0x377   :  { %861 = vmatmul.f32.gmra.mxu3 %v767_v50 }
 0x3ca   :  { %v824_v1 = vpop.f32.mrf.mxu3 }
 0x3d2   :  { %v827_v2 = vpop.f32.mrf.mxu3 }
 0x3da   :  { %v830_v3 = vpop.f32.mrf.mxu3 }
 0x3df   :  { %v853_v6 = vpop.f32.mrf.mxu0 }
 0x3e0   :  { %v854_v8 = vadd.f32 %v853_v6, %v824_v1 }
 0x3e2   :  { %v867_v10 = vadd.f32 %v1041_v5, %v854_v8  ;;  %v833_v11 = vpop.f32.mrf.mxu3 }
 0x3e4   :  { %v871_v13 = vmax.f32 %v867_v10, 0.0 }
 0x3e6   :  { %v922_v14 = vadd.f32 %v911_v12, %v871_v13 }
 0x3e8   :  { %v926_v16 = vmax.f32 %v922_v14, 0.0 }
 0x3ea   :  { %v856_v17 = vpop.f32.mrf.mxu3  ;;  %964 = vmatmul.f32.vlgmr.msrb.gmra.mxu2 %v926_v16 }
 0x3eb   :  { %v857_v18 = vadd.f32 %v856_v17, %v827_v2 }
 0x3ed   :  { %v868_v19 = vadd.f32 %v1041_v5, %v857_v18 }
 0x3ef   :  { %v872_v21 = vmax.f32 %v868_v19, 0.0 }
 0x3f1   :  { %v923_v22 = vadd.f32 %v914_v20, %v872_v21 }
 0x3f2   :  { %v859_v24 = vpop.f32.mrf.mxu3 }
 0x3f3   :  { %v860_v25 = vadd.f32 %v859_v24, %v830_v3  ;;  %v927_v27 = vmax.f32 %v923_v22, 0.0 }
 0x3f5   :  { %v869_v30 = vadd.f32 %v1041_v5, %v860_v25  ;;  %967 = vmatmul.f32.gmra.mxu2 %v927_v27 }
 0x3f7   :  { %v873_v32 = vmax.f32 %v869_v30, 0.0 }
 0x3f9   :  { %v924_v33 = vadd.f32 %v917_v31, %v873_v32 }
 0x3fa   :  { %v862_v35 = vpop.f32.mrf.mxu3 }
 0x3fb   :  { %v863_v36 = vadd.f32 %v862_v35, %v833_v11  ;;  %v928_v52 = vmax.f32 %v924_v33, 0.0 }
 0x3fd   :  { %v870_v38 = vadd.f32 %v1041_v5, %v863_v36  ;;  %970 = vmatmul.f32.gmra.mxu2 %v928_v52 }
 0x3ff   :  { %v874_v40 = vmax.f32 %v870_v38, 0.0 }
 0x401   :  { %v925_v41 = vadd.f32 %v920_v39, %v874_v40 }
 0x403   :  { %v929_v42 = vmax.f32 %v925_v41, 0.0 }
 0x405   :  { %973 = vmatmul.f32.gmra.mxu2 %v929_v42 }
 0x46d   :  { %v965_v45 = vpop.f32.mrf.mxu2 }
 0x46e   :  { %v966_v46 = vadd.f32 %v1042_v44, %v965_v45 }
 0x470   :  { %977 = vst [vmem:[#allocation7] sm:$0xff] %v966_v46 }
 0x478   :  { %v968_v62 = vpop.f32.mrf.mxu2 }
 0x479   :  { %v969_v29 = vadd.f32 %v1042_v44, %v968_v62 }
 0x47b   :  { %978 = vst [vmem:[#allocation7 + $0x8] sm:$0xff] %v969_v29 }
 0x480   :  { %v971_v47 = vpop.f32.mrf.mxu2 }
 0x481   :  { %v972_v48 = vadd.f32 %v1042_v44, %v971_v47 }
 0x483   :  { %979 = vst [vmem:[#allocation7 + $0x10] sm:$0xff] %v972_v48 }
 0x488   :  { %v974_v9 = vpop.f32.mrf.mxu2 }
 0x489   :  { %v975_v49 = vadd.f32 %v1042_v44, %v974_v9 }
 0x48b   :  { %980 = vst [vmem:[#allocation7 + $0x18] sm:$0xff] %v975_v49 }
 0x48c   :  { %993 = dma.vmem_to_hbm [thread:$0]  %s986_s1, 512, %s988_s23, [#allocation4], %s1122_s17, %s1122_s17, %s1123_s18  }
 0x48d   :  { %1119 = dma.done.wait [#allocation4], 512  }
 0x48e   :  { %1120 = vsyncadd [#allocation4], 4294966784 }
 0x48f   :  { %998 = vsyncpa [#allocation3], 1 }
 0x490   :  { %999 = vsyncpa [#allocation6], 1 }
 0x491   :  { %1000 = vsyncpa [#allocation4], 1 }

</bundles_post_ra>
